<compile_context>
chip_gen: v6e
topology: v6e:2x2x1
jax: 0.10.0
libtpu: 0.0.40
codegen_flags: <defaults>
</compile_context>

<pallas_src>
import functools

import jax
import jax.numpy as jnp
from jax.experimental import pallas as pl
from jax.experimental.pallas import tpu as pltpu


# ----------------------------------------------------------------------------
# Pallas kernel
# ----------------------------------------------------------------------------
def eda_kernel(xc_ref, xt_ref, xb_ref, w0_ref, taps_ref, bias_ref, hw_ref,
               out_ref, xwin_ref, *, H, W, TH, HALO, DIL):
    """One (batch, H-tile) grid step.

    xc_ref  : (1, Cin, TH*W)    centre rows of the input tile            (bf16)
    xt_ref  : (1, Cin, HALO*W)  rows just above the tile (clamped at 0)  (bf16)
    xb_ref  : (1, Cin, HALO*W)  rows just below the tile (clamped at H)  (bf16)
    w0_ref  : (K, Cin)          1x1 conv weight, BN0 folded              (bf16)
    taps_ref: (4, 3K, K)        [3x1_a, 1x3_a, 3x1_b, 1x3_b] tap stacks  (bf16)
    bias_ref: (5, K, 1)         [b0, b31a, b13a, b31b, b13b]             (f32)
    hw_ref  : (2, EXT*W)        [row index, col index] of each lane      (int32)
    out_ref : (1, K+Cin, TH*W)  conv result rows [0,K), residual [K,K+Cin)
    xwin_ref: (Cin, EXT*W)      VMEM scratch for the assembled halo'd window
    """
    K = w0_ref.shape[0]
    cin = xc_ref.shape[1]
    t = pl.program_id(1)
    hW, cW = HALO * W, TH * W
    extW = hW + cW + hW

    # ---- assemble the (Cin, EXT*W) halo'd window in VMEM -------------------
    xwin_ref[:, 0:hW] = xt_ref[0]
    xwin_ref[:, hW:hW + cW] = xc_ref[0]
    xwin_ref[:, hW + cW:extW] = xb_ref[0]
    xw = xwin_ref[...]                                      # (Cin, EXT*W) bf16

    # per-lane row/col indices (precomputed in the wrapper: no per-lane // W)
    h_loc = hw_ref[0:1, :]                                  # (1, EXT*W) int32
    w_loc = hw_ref[1:2, :]
    h_glob = h_loc + (t * TH - HALO)                        # global image row

    # shifted gather in the flattened-lane layout:
    #   shift_h(y, off)[:, s] = y[:, s + off rows]  (0 outside the image)
    #   shift_w(y, off)[:, s] = y[:, s + off cols]  (0 outside the row)
    # XLU rolls + VPU selects; out-of-image / clamped-halo data is masked away.
    def shift_h(y, off):
        r = pltpu.roll(y, (-off * W) % extW, axis=1)
        src = h_glob + off
        return jnp.where((src >= 0) & (src < H), r, 0.0)

    def shift_w(y, off):
        r = pltpu.roll(y, (-off) % extW, axis=1)
        src = w_loc + off
        return jnp.where((src >= 0) & (src < W), r, 0.0)

    # ---- stage 0: 1x1 conv (+ folded BN0) + ReLU ---------------------------
    h = jnp.dot(w0_ref[...], xw, preferred_element_type=jnp.float32)
    h = jnp.maximum(h + bias_ref[0], 0.0)                   # (K, EXT*W) f32

    # ---- separable stage: 3x1 conv -> 1x3 conv (+ folded BN) -> ReLU -------
    # The 3 taps of each conv are fused into ONE (3K,K)@(K,EXT*W) MXU matmul;
    # per-tap slices are shift-accumulated in registers (no extra scratch).
    def sep_stage(h_f32, tap_v, tap_h, b_v, b_h, d):
        hb = h_f32.astype(jnp.bfloat16)
        y = jnp.dot(tap_v, hb, preferred_element_type=jnp.float32)     # (3K, ·)
        z = y[K:2 * K] + b_v
        z = z + shift_h(y[0:K], -d) + shift_h(y[2 * K:3 * K], d)

        zb = z.astype(jnp.bfloat16)
        y = jnp.dot(tap_h, zb, preferred_element_type=jnp.float32)     # (3K, ·)
        o = y[K:2 * K] + b_h
        o = o + shift_w(y[0:K], -d) + shift_w(y[2 * K:3 * K], d)
        return jnp.maximum(o, 0.0)

    h = sep_stage(h, taps_ref[0], taps_ref[1], bias_ref[1], bias_ref[2], 1)
    h = sep_stage(h, taps_ref[2], taps_ref[3], bias_ref[3], bias_ref[4], DIL)

    # ---- output: torch.cat([conv_out, input], dim=1) on the centre rows ----
    # TODO(synk): when chaining EDABlocks, fuse this concat into the next
    # block's 1x1 conv (split weight) instead of writing the residual rows.
    out_ref[0, 0:K, :] = h[:, hW:hW + cW].astype(out_ref.dtype)
    out_ref[0, K:K + cin, :] = xc_ref[0]


# ----------------------------------------------------------------------------
# Tiling / VMEM helpers
# ----------------------------------------------------------------------------
def _choose_h_tiling(H, W, dil):
    """Pick (TH, HALO): TH | H, HALO | TH, HALO >= dil+1, and both TH*W and
    HALO*W multiples of 128 so every block stays lane-dense and aligned."""
    need = dil + 1
    candidates = []
    for th in range(1, H + 1):
        if H % th or (th * W) % 128:
            continue
        halos = [hh for hh in range(need, th + 1)
                 if th % hh == 0 and (hh * W) % 128 == 0]
        if halos:
            candidates.append((th, halos[0]))
    if not candidates:
        # TODO(synk): odd image sizes (H*W not a multiple of 128, or dilation
        # larger than any admissible tile) need a padded/masked fallback.
        raise ValueError(f"no lane-aligned H tiling for H={H} W={W} dil={dil}")
    multi = [c for c in candidates if H // c[0] >= 2]   # >=2 pipeline steps
    big = [c for c in multi if c[0] * W >= 512]         # lane-dense tiles
    for group in (big, multi, candidates):
        if group:
            return min(group)


def _vmem_limit_bytes():
    # Explicit scoped-VMEM budget (defaults are only 16-32 MiB).  v5e/v6e have
    # 128 MiB of VMEM per TensorCore, v7x only 64 MiB -- keep >=25% headroom.
    cap = 64 * 1024 * 1024
    try:
        cap = int(pltpu.get_tpu_info().vmem_capacity_bytes)
    except Exception:
        pass
    return int(min(cap * 3 // 4, 96 * 1024 * 1024))


# ----------------------------------------------------------------------------
# Wrapper (glue: free reshapes + weight packing; BN folding in fold_params)
# ----------------------------------------------------------------------------
def eda_block_pallas(x_nchw, folded, dilated, *, compute_dtype=jnp.bfloat16):
    N, Cin, H, W = x_nchw.shape
    K = folded["w0"].shape[0]
    dil = int(dilated)
    assert dil >= 1

    TH, HALO = _choose_h_tiling(H, W, dil)
    T = H // TH
    r = TH // HALO
    ext = TH + 2 * HALO
    n_hblk = H // HALO

    # bf16 data path: the kernel is bandwidth bound, bf16 is MXU-native.
    x3 = x_nchw.astype(compute_dtype).reshape(N, Cin, H * W)     # free reshape
    w0 = folded["w0"].astype(compute_dtype)                      # (K, Cin)
    taps = jnp.stack([folded["w31a"], folded["w13a"],
                      folded["w31b"], folded["w13b"]]).astype(compute_dtype)
    biases = jnp.stack([folded["b0"], folded["b31a"], folded["b13a"],
                        folded["b31b"], folded["b13b"]]).astype(jnp.float32)
    lane = jnp.arange(ext * W, dtype=jnp.int32)
    hw_idx = jnp.stack([lane // W, lane % W]).astype(jnp.int32)  # (2, ext*W)

    def const_spec(arr):
        nd = arr.ndim
        return pl.BlockSpec(arr.shape, lambda n, t, _nd=nd: (0,) * _nd)

    in_specs = [
        # centre rows of the tile
        pl.BlockSpec((1, Cin, TH * W), lambda n, t: (n, 0, t)),
        # HALO rows just above / below the tile (same input array, different
        # blocking; clamped at the image edges -- the kernel masks those rows).
        pl.BlockSpec((1, Cin, HALO * W),
                     lambda n, t: (n, 0, jnp.maximum(t * r - 1, 0))),
        pl.BlockSpec((1, Cin, HALO * W),
                     lambda n, t: (n, 0, jnp.minimum((t + 1) * r, n_hblk - 1))),
        const_spec(w0),
        const_spec(taps),
        const_spec(biases),
        const_spec(hw_idx),
    ]

    kernel = functools.partial(eda_kernel, H=H, W=W, TH=TH, HALO=HALO, DIL=dil)

    out_flat = pl.pallas_call(
        kernel,
        out_shape=jax.ShapeDtypeStruct((N, K + Cin, H * W), compute_dtype),
        grid=(N, T),
        in_specs=in_specs,
        out_specs=pl.BlockSpec((1, K + Cin, TH * W), lambda n, t: (n, 0, t)),
        scratch_shapes=[pltpu.VMEM((Cin, ext * W), compute_dtype)],
        compiler_params=pltpu.CompilerParams(
            dimension_semantics=("parallel", "parallel"),
            vmem_limit_bytes=_vmem_limit_bytes()),
    )(x3, x3, x3, w0, taps, biases, hw_idx)

    return out_flat.reshape(N, K + Cin, H, W)                   # free reshape


# ----------------------------------------------------------------------------
# Parameter construction (deterministic, synthetic) + BN folding
# ----------------------------------------------------------------------------
def make_params(key, cin, k):
    ks = jax.random.split(key, 20)

    def nrm(i, shape, scale=0.1):
        return jax.random.normal(ks[i], shape, jnp.float32) * scale

    p = {
        # conv1x1 (PyTorch weight (k, cin, 1, 1) stored here as (cin, k))
        "w_1x1": nrm(0, (cin, k)), "b_1x1": nrm(1, (k,)),
        "g0": 1.0 + nrm(2, (k,)), "be0": nrm(3, (k,)),
        "m0": nrm(4, (k,)), "v0": jnp.abs(nrm(5, (k,))) + 0.5,
        # 3x1 / 1x3 convs stored as (3 taps, in_ch, out_ch)
        "w31a": nrm(6, (3, k, k)), "b31a": nrm(7, (k,)),
        "w13a": nrm(8, (3, k, k)), "b13a": nrm(9, (k,)),
        "g1": 1.0 + nrm(10, (k,)), "be1": nrm(11, (k,)),
        "m1": nrm(12, (k,)), "v1": jnp.abs(nrm(13, (k,))) + 0.5,
        "w31b": nrm(14, (3, k, k)), "b31b": nrm(15, (k,)),
        "w13b": nrm(16, (3, k, k)), "b13b": nrm(17, (k,)),
        "g2": 1.0 + nrm(18, (k,)), "be2": nrm(19, (k,)),
        "m2": nrm(4, (k,)) * 0.5, "v2": jnp.abs(nrm(5, (k,))) * 0.5 + 0.5,
    }
    return p


def fold_params(p, eps=1e-5):
    def bn_affine(g, b, m, v):
        s = g / jnp.sqrt(v + eps)
        return s, b - m * s

    s0, t0 = bn_affine(p["g0"], p["be0"], p["m0"], p["v0"])
    s1, t1 = bn_affine(p["g1"], p["be1"], p["m1"], p["v1"])
    s2, t2 = bn_affine(p["g2"], p["be2"], p["m2"], p["v2"])

    def cat_taps(w):
        # (3, in, out) -> (3*out, in): rows [t*k,(t+1)*k) hold W_t^T
        return jnp.transpose(w, (0, 2, 1)).reshape(-1, w.shape[1])

    return {
        "w0":  (p["w_1x1"] * s0[None, :]).T,                  # (k, Cin)
        "b0":  (p["b_1x1"] * s0 + t0).reshape(-1, 1),         # (k, 1)
        "w31a": cat_taps(p["w31a"]),
        "b31a": p["b31a"].reshape(-1, 1),
        "w13a": cat_taps(p["w13a"] * s1[None, None, :]),
        "b13a": (p["b13a"] * s1 + t1).reshape(-1, 1),
        "w31b": cat_taps(p["w31b"]),
        "b31b": p["b31b"].reshape(-1, 1),
        "w13b": cat_taps(p["w13b"] * s2[None, None, :]),
        "b13b": (p["b13b"] * s2 + t2).reshape(-1, 1),
    }


# ----------------------------------------------------------------------------
# Pure-JAX reference (raw, unfolded params; eval-mode BN; NHWC internally)
# ----------------------------------------------------------------------------
def eda_block_reference(x_nchw, p, dilated, eps=1e-5):
    x = jnp.transpose(x_nchw, (0, 2, 3, 1)).astype(jnp.float32)
    N, H, W, Cin = x.shape

    def bn(h, g, b, m, v):
        return (h - m) * (g / jnp.sqrt(v + eps)) + b

    def conv3x1(h, w_taps, b, d):
        hp = jnp.pad(h, ((0, 0), (d, d), (0, 0), (0, 0)))
        out = sum(jnp.einsum("nhwc,ck->nhwk", hp[:, t * d:t * d + H], w_taps[t])
                  for t in range(3))
        return out + b

    def conv1x3(h, w_taps, b, d):
        hp = jnp.pad(h, ((0, 0), (0, 0), (d, d), (0, 0)))
        out = sum(jnp.einsum("nhwc,ck->nhwk", hp[:, :, t * d:t * d + W], w_taps[t])
                  for t in range(3))
        return out + b

    h = jnp.einsum("nhwc,ck->nhwk", x, p["w_1x1"]) + p["b_1x1"]
    h = jax.nn.relu(bn(h, p["g0"], p["be0"], p["m0"], p["v0"]))

    h = conv3x1(h, p["w31a"], p["b31a"], 1)
    h = conv1x3(h, p["w13a"], p["b13a"], 1)
    h = jax.nn.relu(bn(h, p["g1"], p["be1"], p["m1"], p["v1"]))

    h = conv3x1(h, p["w31b"], p["b31b"], dilated)
    h = conv1x3(h, p["w13b"], p["b13b"], dilated)
    h = jax.nn.relu(bn(h, p["g2"], p["be2"], p["m2"], p["v2"]))

    # Dropout2d: identity in eval mode.
    y = jnp.concatenate([h, x], axis=-1)
    return jnp.transpose(y, (0, 3, 1, 2))


# ----------------------------------------------------------------------------
# Main
# ----------------------------------------------------------------------------
if __name__ == "__main__":
    key = jax.random.PRNGKey(0)
    k_x, k_p = jax.random.split(key)

    # Small shapes: EDABlock(ninput=8, dilated=2, k=16) on (2, 8, 16, 16) NCHW.
    N, Cin, H, W = 2, 8, 16, 16
    K, DILATED = 16, 2

    x = jax.random.normal(k_x, (N, Cin, H, W), jnp.float32)
    raw = make_params(k_p, Cin, K)
    folded = fold_params(raw)

    out = eda_block_pallas(x, folded, DILATED)
    out = jax.block_until_ready(out)

    ref = eda_block_reference(x, raw, DILATED)
    ref = jax.block_until_ready(ref)

    assert out.shape == (N, K + Cin, H, W), out.shape
    err = float(jnp.max(jnp.abs(out.astype(jnp.float32) - ref)))
    # bf16 data path => looser tolerance than an f32 pipeline.
    assert jnp.allclose(out.astype(jnp.float32), ref, rtol=5e-2, atol=7.5e-2), err

    print("KERNEL_OK")
</pallas_src>

<mosaic_0001>
module attributes {stable_mosaic.version = 11 : i64} {
  func.func @eda_kernel(%arg0: i32, %arg1: i32, %arg2: memref<1x8x128xbf16, #tpu.memory_space<vmem>>, %arg3: memref<1x8x128xbf16, #tpu.memory_space<vmem>>, %arg4: memref<1x8x128xbf16, #tpu.memory_space<vmem>>, %arg5: memref<16x8xbf16, #tpu.memory_space<vmem>>, %arg6: memref<4x48x16xbf16, #tpu.memory_space<vmem>>, %arg7: memref<5x16x1xf32, #tpu.memory_space<vmem>>, %arg8: memref<2x384xi32, #tpu.memory_space<vmem>>, %arg9: memref<1x24x128xbf16, #tpu.memory_space<vmem>>, %arg10: memref<8x384xbf16, #tpu.memory_space<vmem>>) attributes {dimension_semantics = [#tpu.dimension_semantics<parallel>, #tpu.dimension_semantics<parallel>], iteration_bounds = array<i64: 2, 2>, scalar_prefetch = 0 : i64, scratch_operands = 1 : i64, tpu.core_type = #tpu.core_type<tc>, window_params = [{transform_indices = @transform_0, window_bounds = array<i64: 1, 8, 128>}, {transform_indices = @transform_1, window_bounds = array<i64: 1, 8, 128>}, {transform_indices = @transform_2, window_bounds = array<i64: 1, 8, 128>}, {pipeline_mode = #tpu.pipeline_mode<synchronous>, transform_indices = @transform_3, window_bounds = array<i64: 16, 8>}, {pipeline_mode = #tpu.pipeline_mode<synchronous>, transform_indices = @transform_4, window_bounds = array<i64: 4, 48, 16>}, {pipeline_mode = #tpu.pipeline_mode<synchronous>, transform_indices = @transform_5, window_bounds = array<i64: 5, 16, 1>}, {pipeline_mode = #tpu.pipeline_mode<synchronous>, transform_indices = @transform_6, window_bounds = array<i64: 2, 384>}, {transform_indices = @transform_7, window_bounds = array<i64: 1, 24, 128>}]} {
    %c0 = arith.constant 0 : index
    %c0_0 = arith.constant 0 : index
    %c0_1 = arith.constant 0 : index
    %0 = vector.load %arg3[%c0, %c0_0, %c0_1] : memref<1x8x128xbf16, #tpu.memory_space<vmem>>, vector<1x8x128xbf16>
    %1 = vector.shape_cast %0 : vector<1x8x128xbf16> to vector<8x128xbf16>
    %c0_2 = arith.constant 0 : index
    %c0_3 = arith.constant 0 : index
    %2 = vector.load %arg10[%c0_2, %c0_3] : memref<8x384xbf16, #tpu.memory_space<vmem>>, vector<8x128xbf16>
    tpu.vector_store %arg10[%c0_2, %c0_3], %1 {strides = array<i32>} : memref<8x384xbf16, #tpu.memory_space<vmem>>, vector<8x128xbf16>,
    %c0_4 = arith.constant 0 : index
    %c0_5 = arith.constant 0 : index
    %c0_6 = arith.constant 0 : index
    %3 = vector.load %arg2[%c0_4, %c0_5, %c0_6] : memref<1x8x128xbf16, #tpu.memory_space<vmem>>, vector<1x8x128xbf16>
    %4 = vector.shape_cast %3 : vector<1x8x128xbf16> to vector<8x128xbf16>
    %c0_7 = arith.constant 0 : index
    %c128 = arith.constant 128 : index
    %5 = vector.load %arg10[%c0_7, %c128] : memref<8x384xbf16, #tpu.memory_space<vmem>>, vector<8x128xbf16>
    tpu.vector_store %arg10[%c0_7, %c128], %4 {strides = array<i32>} : memref<8x384xbf16, #tpu.memory_space<vmem>>, vector<8x128xbf16>,
    %c0_8 = arith.constant 0 : index
    %c0_9 = arith.constant 0 : index
    %c0_10 = arith.constant 0 : index
    %6 = vector.load %arg4[%c0_8, %c0_9, %c0_10] : memref<1x8x128xbf16, #tpu.memory_space<vmem>>, vector<1x8x128xbf16>
    %7 = vector.shape_cast %6 : vector<1x8x128xbf16> to vector<8x128xbf16>
    %c0_11 = arith.constant 0 : index
    %c256 = arith.constant 256 : index
    %8 = vector.load %arg10[%c0_11, %c256] : memref<8x384xbf16, #tpu.memory_space<vmem>>, vector<8x128xbf16>
    tpu.vector_store %arg10[%c0_11, %c256], %7 {strides = array<i32>} : memref<8x384xbf16, #tpu.memory_space<vmem>>, vector<8x128xbf16>,
    %c0_12 = arith.constant 0 : index
    %c0_13 = arith.constant 0 : index
    %9 = vector.load %arg10[%c0_12, %c0_13] : memref<8x384xbf16, #tpu.memory_space<vmem>>, vector<8x384xbf16>
    %c0_14 = arith.constant 0 : index
    %c0_15 = arith.constant 0 : index
    %10 = vector.load %arg8[%c0_14, %c0_15] : memref<2x384xi32, #tpu.memory_space<vmem>>, vector<1x384xi32>
    %c1 = arith.constant 1 : index
    %c0_16 = arith.constant 0 : index
    %11 = vector.load %arg8[%c1, %c0_16] : memref<2x384xi32, #tpu.memory_space<vmem>>, vector<1x384xi32>
    %c8_i32 = arith.constant 8 : i32
    %12 = arith.muli %arg1, %c8_i32 : i32
    %c8_i32_17 = arith.constant 8 : i32
    %13 = arith.subi %12, %c8_i32_17 : i32
    %14 = vector.broadcast %13 : i32 to vector<1x384xi32>
    %15 = arith.addi %10, %14 : vector<1x384xi32>
    %c0_18 = arith.constant 0 : index
    %c0_19 = arith.constant 0 : index
    %16 = vector.load %arg5[%c0_18, %c0_19] : memref<16x8xbf16, #tpu.memory_space<vmem>>, vector<16x8xbf16>
    %cst = arith.constant dense<0.000000e+00> : vector<16x384xf32>
    %17 = tpu.matmul %16, %9, %cst {dimension_numbers = #tpu.dot_dimension_numbers<[1], [0], [0], [1], [0, 0, 1, 1], [], []>} : vector<16x8xbf16>, vector<8x384xbf16>, vector<16x384xf32> -> vector<16x384xf32>
    %c0_20 = arith.constant 0 : index
    %c0_21 = arith.constant 0 : index
    %c0_22 = arith.constant 0 : index
    %18 = vector.load %arg7[%c0_20, %c0_21, %c0_22] : memref<5x16x1xf32, #tpu.memory_space<vmem>>, vector<1x16x1xf32>
    %19 = vector.shape_cast %18 : vector<1x16x1xf32> to vector<16x1xf32>
    %20 = vector.broadcast %19 : vector<16x1xf32> to vector<16x384xf32>
    %21 = arith.addf %17, %20 : vector<16x384xf32>
    %cst_23 = arith.constant 0.000000e+00 : f32
    %22 = vector.broadcast %cst_23 : f32 to vector<16x384xf32>
    %23 = arith.maximumf %21, %22 : vector<16x384xf32>
    %c0_24 = arith.constant 0 : index
    %c0_25 = arith.constant 0 : index
    %c0_26 = arith.constant 0 : index
    %24 = vector.load %arg6[%c0_24, %c0_25, %c0_26] : memref<4x48x16xbf16, #tpu.memory_space<vmem>>, vector<1x48x16xbf16>
    %25 = vector.shape_cast %24 : vector<1x48x16xbf16> to vector<48x16xbf16>
    %c1_27 = arith.constant 1 : index
    %c0_28 = arith.constant 0 : index
    %c0_29 = arith.constant 0 : index
    %26 = vector.load %arg6[%c1_27, %c0_28, %c0_29] : memref<4x48x16xbf16, #tpu.memory_space<vmem>>, vector<1x48x16xbf16>
    %27 = vector.shape_cast %26 : vector<1x48x16xbf16> to vector<48x16xbf16>
    %c1_30 = arith.constant 1 : index
    %c0_31 = arith.constant 0 : index
    %c0_32 = arith.constant 0 : index
    %28 = vector.load %arg7[%c1_30, %c0_31, %c0_32] : memref<5x16x1xf32, #tpu.memory_space<vmem>>, vector<1x16x1xf32>
    %29 = vector.shape_cast %28 : vector<1x16x1xf32> to vector<16x1xf32>
    %c2 = arith.constant 2 : index
    %c0_33 = arith.constant 0 : index
    %c0_34 = arith.constant 0 : index
    %30 = vector.load %arg7[%c2, %c0_33, %c0_34] : memref<5x16x1xf32, #tpu.memory_space<vmem>>, vector<1x16x1xf32>
    %31 = vector.shape_cast %30 : vector<1x16x1xf32> to vector<16x1xf32>
    %32 = arith.truncf %23 : vector<16x384xf32> to vector<16x384xbf16>
    %cst_35 = arith.constant dense<0.000000e+00> : vector<48x384xf32>
    %33 = tpu.matmul %25, %32, %cst_35 {dimension_numbers = #tpu.dot_dimension_numbers<[1], [0], [0], [1], [0, 0, 1, 1], [], []>} : vector<48x16xbf16>, vector<16x384xbf16>, vector<48x384xf32> -> vector<48x384xf32>
    %34 = vector.extract_strided_slice %33 {offsets = [16, 0], sizes = [16, 384], strides = [1, 1]} : vector<48x384xf32> to vector<16x384xf32>
    %35 = vector.broadcast %29 : vector<16x1xf32> to vector<16x384xf32>
    %36 = arith.addf %34, %35 : vector<16x384xf32>
    %37 = vector.extract_strided_slice %33 {offsets = [0, 0], sizes = [16, 384], strides = [1, 1]} : vector<48x384xf32> to vector<16x384xf32>
    %c16_i32 = arith.constant 16 : i32
    %38 = tpu.dynamic_rotate %37 by %c16_i32 dim 1 : vector<16x384xf32>, i32 -> vector<16x384xf32>
    %c-1_i32 = arith.constant -1 : i32
    %39 = vector.broadcast %c-1_i32 : i32 to vector<1x384xi32>
    %40 = arith.addi %15, %39 : vector<1x384xi32>
    %c0_i32 = arith.constant 0 : i32
    %41 = vector.broadcast %c0_i32 : i32 to vector<1x384xi32>
    %42 = arith.cmpi sge, %40, %41 : vector<1x384xi32>
    %c16_i32_36 = arith.constant 16 : i32
    %43 = vector.broadcast %c16_i32_36 : i32 to vector<1x384xi32>
    %44 = arith.cmpi slt, %40, %43 : vector<1x384xi32>
    %45 = arith.andi %42, %44 : vector<1x384xi1>
    %cst_37 = arith.constant 0.000000e+00 : f32
    %46 = vector.shape_cast %45 : vector<1x384xi1> to vector<1x384xi1>
    %47 = vector.broadcast %46 : vector<1x384xi1> to vector<16x384xi1>
    %48 = vector.broadcast %cst_37 : f32 to vector<16x384xf32>
    %49 = arith.select %47, %38, %48 : vector<16x384xi1>, vector<16x384xf32>
    %50 = arith.addf %36, %49 : vector<16x384xf32>
    %51 = vector.extract_strided_slice %33 {offsets = [32, 0], sizes = [16, 384], strides = [1, 1]} : vector<48x384xf32> to vector<16x384xf32>
    %c368_i32 = arith.constant 368 : i32
    %52 = tpu.dynamic_rotate %51 by %c368_i32 dim 1 : vector<16x384xf32>, i32 -> vector<16x384xf32>
    %c1_i32 = arith.constant 1 : i32
    %53 = vector.broadcast %c1_i32 : i32 to vector<1x384xi32>
    %54 = arith.addi %15, %53 : vector<1x384xi32>
    %c0_i32_38 = arith.constant 0 : i32
    %55 = vector.broadcast %c0_i32_38 : i32 to vector<1x384xi32>
    %56 = arith.cmpi sge, %54, %55 : vector<1x384xi32>
    %c16_i32_39 = arith.constant 16 : i32
    %57 = vector.broadcast %c16_i32_39 : i32 to vector<1x384xi32>
    %58 = arith.cmpi slt, %54, %57 : vector<1x384xi32>
    %59 = arith.andi %56, %58 : vector<1x384xi1>
    %cst_40 = arith.constant 0.000000e+00 : f32
    %60 = vector.shape_cast %59 : vector<1x384xi1> to vector<1x384xi1>
    %61 = vector.broadcast %60 : vector<1x384xi1> to vector<16x384xi1>
    %62 = vector.broadcast %cst_40 : f32 to vector<16x384xf32>
    %63 = arith.select %61, %52, %62 : vector<16x384xi1>, vector<16x384xf32>
    %64 = arith.addf %50, %63 : vector<16x384xf32>
    %65 = arith.truncf %64 : vector<16x384xf32> to vector<16x384xbf16>
    %cst_41 = arith.constant dense<0.000000e+00> : vector<48x384xf32>
    %66 = tpu.matmul %27, %65, %cst_41 {dimension_numbers = #tpu.dot_dimension_numbers<[1], [0], [0], [1], [0, 0, 1, 1], [], []>} : vector<48x16xbf16>, vector<16x384xbf16>, vector<48x384xf32> -> vector<48x384xf32>
    %67 = vector.extract_strided_slice %66 {offsets = [16, 0], sizes = [16, 384], strides = [1, 1]} : vector<48x384xf32> to vector<16x384xf32>
    %68 = vector.broadcast %31 : vector<16x1xf32> to vector<16x384xf32>
    %69 = arith.addf %67, %68 : vector<16x384xf32>
    %70 = vector.extract_strided_slice %66 {offsets = [0, 0], sizes = [16, 384], strides = [1, 1]} : vector<48x384xf32> to vector<16x384xf32>
    %c1_i32_42 = arith.constant 1 : i32
    %71 = tpu.dynamic_rotate %70 by %c1_i32_42 dim 1 : vector<16x384xf32>, i32 -> vector<16x384xf32>
    %c-1_i32_43 = arith.constant -1 : i32
    %72 = vector.broadcast %c-1_i32_43 : i32 to vector<1x384xi32>
    %73 = arith.addi %11, %72 : vector<1x384xi32>
    %c0_i32_44 = arith.constant 0 : i32
    %74 = vector.broadcast %c0_i32_44 : i32 to vector<1x384xi32>
    %75 = arith.cmpi sge, %73, %74 : vector<1x384xi32>
    %c16_i32_45 = arith.constant 16 : i32
    %76 = vector.broadcast %c16_i32_45 : i32 to vector<1x384xi32>
    %77 = arith.cmpi slt, %73, %76 : vector<1x384xi32>
    %78 = arith.andi %75, %77 : vector<1x384xi1>
    %cst_46 = arith.constant 0.000000e+00 : f32
    %79 = vector.shape_cast %78 : vector<1x384xi1> to vector<1x384xi1>
    %80 = vector.broadcast %79 : vector<1x384xi1> to vector<16x384xi1>
    %81 = vector.broadcast %cst_46 : f32 to vector<16x384xf32>
    %82 = arith.select %80, %71, %81 : vector<16x384xi1>, vector<16x384xf32>
    %83 = arith.addf %69, %82 : vector<16x384xf32>
    %84 = vector.extract_strided_slice %66 {offsets = [32, 0], sizes = [16, 384], strides = [1, 1]} : vector<48x384xf32> to vector<16x384xf32>
    %c383_i32 = arith.constant 383 : i32
    %85 = tpu.dynamic_rotate %84 by %c383_i32 dim 1 : vector<16x384xf32>, i32 -> vector<16x384xf32>
    %c1_i32_47 = arith.constant 1 : i32
    %86 = vector.broadcast %c1_i32_47 : i32 to vector<1x384xi32>
    %87 = arith.addi %11, %86 : vector<1x384xi32>
    %c0_i32_48 = arith.constant 0 : i32
    %88 = vector.broadcast %c0_i32_48 : i32 to vector<1x384xi32>
    %89 = arith.cmpi sge, %87, %88 : vector<1x384xi32>
    %c16_i32_49 = arith.constant 16 : i32
    %90 = vector.broadcast %c16_i32_49 : i32 to vector<1x384xi32>
    %91 = arith.cmpi slt, %87, %90 : vector<1x384xi32>
    %92 = arith.andi %89, %91 : vector<1x384xi1>
    %cst_50 = arith.constant 0.000000e+00 : f32
    %93 = vector.shape_cast %92 : vector<1x384xi1> to vector<1x384xi1>
    %94 = vector.broadcast %93 : vector<1x384xi1> to vector<16x384xi1>
    %95 = vector.broadcast %cst_50 : f32 to vector<16x384xf32>
    %96 = arith.select %94, %85, %95 : vector<16x384xi1>, vector<16x384xf32>
    %97 = arith.addf %83, %96 : vector<16x384xf32>
    %cst_51 = arith.constant 0.000000e+00 : f32
    %98 = vector.broadcast %cst_51 : f32 to vector<16x384xf32>
    %99 = arith.maximumf %97, %98 : vector<16x384xf32>
    %c2_52 = arith.constant 2 : index
    %c0_53 = arith.constant 0 : index
    %c0_54 = arith.constant 0 : index
    %100 = vector.load %arg6[%c2_52, %c0_53, %c0_54] : memref<4x48x16xbf16, #tpu.memory_space<vmem>>, vector<1x48x16xbf16>
    %101 = vector.shape_cast %100 : vector<1x48x16xbf16> to vector<48x16xbf16>
    %c3 = arith.constant 3 : index
    %c0_55 = arith.constant 0 : index
    %c0_56 = arith.constant 0 : index
    %102 = vector.load %arg6[%c3, %c0_55, %c0_56] : memref<4x48x16xbf16, #tpu.memory_space<vmem>>, vector<1x48x16xbf16>
    %103 = vector.shape_cast %102 : vector<1x48x16xbf16> to vector<48x16xbf16>
    %c3_57 = arith.constant 3 : index
    %c0_58 = arith.constant 0 : index
    %c0_59 = arith.constant 0 : index
    %104 = vector.load %arg7[%c3_57, %c0_58, %c0_59] : memref<5x16x1xf32, #tpu.memory_space<vmem>>, vector<1x16x1xf32>
    %105 = vector.shape_cast %104 : vector<1x16x1xf32> to vector<16x1xf32>
    %c4 = arith.constant 4 : index
    %c0_60 = arith.constant 0 : index
    %c0_61 = arith.constant 0 : index
    %106 = vector.load %arg7[%c4, %c0_60, %c0_61] : memref<5x16x1xf32, #tpu.memory_space<vmem>>, vector<1x16x1xf32>
    %107 = vector.shape_cast %106 : vector<1x16x1xf32> to vector<16x1xf32>
    %108 = arith.truncf %99 : vector<16x384xf32> to vector<16x384xbf16>
    %cst_62 = arith.constant dense<0.000000e+00> : vector<48x384xf32>
    %109 = tpu.matmul %101, %108, %cst_62 {dimension_numbers = #tpu.dot_dimension_numbers<[1], [0], [0], [1], [0, 0, 1, 1], [], []>} : vector<48x16xbf16>, vector<16x384xbf16>, vector<48x384xf32> -> vector<48x384xf32>
    %110 = vector.extract_strided_slice %109 {offsets = [16, 0], sizes = [16, 384], strides = [1, 1]} : vector<48x384xf32> to vector<16x384xf32>
    %111 = vector.broadcast %105 : vector<16x1xf32> to vector<16x384xf32>
    %112 = arith.addf %110, %111 : vector<16x384xf32>
    %113 = vector.extract_strided_slice %109 {offsets = [0, 0], sizes = [16, 384], strides = [1, 1]} : vector<48x384xf32> to vector<16x384xf32>
    %c32_i32 = arith.constant 32 : i32
    %114 = tpu.dynamic_rotate %113 by %c32_i32 dim 1 : vector<16x384xf32>, i32 -> vector<16x384xf32>
    %c-2_i32 = arith.constant -2 : i32
    %115 = vector.broadcast %c-2_i32 : i32 to vector<1x384xi32>
    %116 = arith.addi %15, %115 : vector<1x384xi32>
    %c0_i32_63 = arith.constant 0 : i32
    %117 = vector.broadcast %c0_i32_63 : i32 to vector<1x384xi32>
    %118 = arith.cmpi sge, %116, %117 : vector<1x384xi32>
    %c16_i32_64 = arith.constant 16 : i32
    %119 = vector.broadcast %c16_i32_64 : i32 to vector<1x384xi32>
    %120 = arith.cmpi slt, %116, %119 : vector<1x384xi32>
    %121 = arith.andi %118, %120 : vector<1x384xi1>
    %cst_65 = arith.constant 0.000000e+00 : f32
    %122 = vector.shape_cast %121 : vector<1x384xi1> to vector<1x384xi1>
    %123 = vector.broadcast %122 : vector<1x384xi1> to vector<16x384xi1>
    %124 = vector.broadcast %cst_65 : f32 to vector<16x384xf32>
    %125 = arith.select %123, %114, %124 : vector<16x384xi1>, vector<16x384xf32>
    %126 = arith.addf %112, %125 : vector<16x384xf32>
    %127 = vector.extract_strided_slice %109 {offsets = [32, 0], sizes = [16, 384], strides = [1, 1]} : vector<48x384xf32> to vector<16x384xf32>
    %c352_i32 = arith.constant 352 : i32
    %128 = tpu.dynamic_rotate %127 by %c352_i32 dim 1 : vector<16x384xf32>, i32 -> vector<16x384xf32>
    %c2_i32 = arith.constant 2 : i32
    %129 = vector.broadcast %c2_i32 : i32 to vector<1x384xi32>
    %130 = arith.addi %15, %129 : vector<1x384xi32>
    %c0_i32_66 = arith.constant 0 : i32
    %131 = vector.broadcast %c0_i32_66 : i32 to vector<1x384xi32>
    %132 = arith.cmpi sge, %130, %131 : vector<1x384xi32>
    %c16_i32_67 = arith.constant 16 : i32
    %133 = vector.broadcast %c16_i32_67 : i32 to vector<1x384xi32>
    %134 = arith.cmpi slt, %130, %133 : vector<1x384xi32>
    %135 = arith.andi %132, %134 : vector<1x384xi1>
    %cst_68 = arith.constant 0.000000e+00 : f32
    %136 = vector.shape_cast %135 : vector<1x384xi1> to vector<1x384xi1>
    %137 = vector.broadcast %136 : vector<1x384xi1> to vector<16x384xi1>
    %138 = vector.broadcast %cst_68 : f32 to vector<16x384xf32>
    %139 = arith.select %137, %128, %138 : vector<16x384xi1>, vector<16x384xf32>
    %140 = arith.addf %126, %139 : vector<16x384xf32>
    %141 = arith.truncf %140 : vector<16x384xf32> to vector<16x384xbf16>
    %cst_69 = arith.constant dense<0.000000e+00> : vector<48x384xf32>
    %142 = tpu.matmul %103, %141, %cst_69 {dimension_numbers = #tpu.dot_dimension_numbers<[1], [0], [0], [1], [0, 0, 1, 1], [], []>} : vector<48x16xbf16>, vector<16x384xbf16>, vector<48x384xf32> -> vector<48x384xf32>
    %143 = vector.extract_strided_slice %142 {offsets = [16, 0], sizes = [16, 384], strides = [1, 1]} : vector<48x384xf32> to vector<16x384xf32>
    %144 = vector.broadcast %107 : vector<16x1xf32> to vector<16x384xf32>
    %145 = arith.addf %143, %144 : vector<16x384xf32>
    %146 = vector.extract_strided_slice %142 {offsets = [0, 0], sizes = [16, 384], strides = [1, 1]} : vector<48x384xf32> to vector<16x384xf32>
    %c2_i32_70 = arith.constant 2 : i32
    %147 = tpu.dynamic_rotate %146 by %c2_i32_70 dim 1 : vector<16x384xf32>, i32 -> vector<16x384xf32>
    %c-2_i32_71 = arith.constant -2 : i32
    %148 = vector.broadcast %c-2_i32_71 : i32 to vector<1x384xi32>
    %149 = arith.addi %11, %148 : vector<1x384xi32>
    %c0_i32_72 = arith.constant 0 : i32
    %150 = vector.broadcast %c0_i32_72 : i32 to vector<1x384xi32>
    %151 = arith.cmpi sge, %149, %150 : vector<1x384xi32>
    %c16_i32_73 = arith.constant 16 : i32
    %152 = vector.broadcast %c16_i32_73 : i32 to vector<1x384xi32>
    %153 = arith.cmpi slt, %149, %152 : vector<1x384xi32>
    %154 = arith.andi %151, %153 : vector<1x384xi1>
    %cst_74 = arith.constant 0.000000e+00 : f32
    %155 = vector.shape_cast %154 : vector<1x384xi1> to vector<1x384xi1>
    %156 = vector.broadcast %155 : vector<1x384xi1> to vector<16x384xi1>
    %157 = vector.broadcast %cst_74 : f32 to vector<16x384xf32>
    %158 = arith.select %156, %147, %157 : vector<16x384xi1>, vector<16x384xf32>
    %159 = arith.addf %145, %158 : vector<16x384xf32>
    %160 = vector.extract_strided_slice %142 {offsets = [32, 0], sizes = [16, 384], strides = [1, 1]} : vector<48x384xf32> to vector<16x384xf32>
    %c382_i32 = arith.constant 382 : i32
    %161 = tpu.dynamic_rotate %160 by %c382_i32 dim 1 : vector<16x384xf32>, i32 -> vector<16x384xf32>
    %c2_i32_75 = arith.constant 2 : i32
    %162 = vector.broadcast %c2_i32_75 : i32 to vector<1x384xi32>
    %163 = arith.addi %11, %162 : vector<1x384xi32>
    %c0_i32_76 = arith.constant 0 : i32
    %164 = vector.broadcast %c0_i32_76 : i32 to vector<1x384xi32>
    %165 = arith.cmpi sge, %163, %164 : vector<1x384xi32>
    %c16_i32_77 = arith.constant 16 : i32
    %166 = vector.broadcast %c16_i32_77 : i32 to vector<1x384xi32>
    %167 = arith.cmpi slt, %163, %166 : vector<1x384xi32>
    %168 = arith.andi %165, %167 : vector<1x384xi1>
    %cst_78 = arith.constant 0.000000e+00 : f32
    %169 = vector.shape_cast %168 : vector<1x384xi1> to vector<1x384xi1>
    %170 = vector.broadcast %169 : vector<1x384xi1> to vector<16x384xi1>
    %171 = vector.broadcast %cst_78 : f32 to vector<16x384xf32>
    %172 = arith.select %170, %161, %171 : vector<16x384xi1>, vector<16x384xf32>
    %173 = arith.addf %159, %172 : vector<16x384xf32>
    %cst_79 = arith.constant 0.000000e+00 : f32
    %174 = vector.broadcast %cst_79 : f32 to vector<16x384xf32>
    %175 = arith.maximumf %173, %174 : vector<16x384xf32>
    %176 = vector.extract_strided_slice %175 {offsets = [0, 128], sizes = [16, 128], strides = [1, 1]} : vector<16x384xf32> to vector<16x128xf32>
    %177 = arith.truncf %176 : vector<16x128xf32> to vector<16x128xbf16>
    %c0_80 = arith.constant 0 : index
    %c0_81 = arith.constant 0 : index
    %c0_82 = arith.constant 0 : index
    %178 = vector.load %arg9[%c0_80, %c0_81, %c0_82] : memref<1x24x128xbf16, #tpu.memory_space<vmem>>, vector<1x16x128xbf16>
    %179 = vector.shape_cast %178 : vector<1x16x128xbf16> to vector<16x128xbf16>
    %180 = vector.shape_cast %177 : vector<16x128xbf16> to vector<1x16x128xbf16>
    tpu.vector_store %arg9[%c0_80, %c0_81, %c0_82], %180 {strides = array<i32>} : memref<1x24x128xbf16, #tpu.memory_space<vmem>>, vector<1x16x128xbf16>,
    %c0_83 = arith.constant 0 : index
    %c0_84 = arith.constant 0 : index
    %c0_85 = arith.constant 0 : index
    %181 = vector.load %arg2[%c0_83, %c0_84, %c0_85] : memref<1x8x128xbf16, #tpu.memory_space<vmem>>, vector<1x8x128xbf16>
    %182 = vector.shape_cast %181 : vector<1x8x128xbf16> to vector<8x128xbf16>
    %c0_86 = arith.constant 0 : index
    %c16 = arith.constant 16 : index
    %c0_87 = arith.constant 0 : index
    %183 = vector.load %arg9[%c0_86, %c16, %c0_87] : memref<1x24x128xbf16, #tpu.memory_space<vmem>>, vector<1x8x128xbf16>
    %184 = vector.shape_cast %183 : vector<1x8x128xbf16> to vector<8x128xbf16>
    %185 = vector.shape_cast %182 : vector<8x128xbf16> to vector<1x8x128xbf16>
    tpu.vector_store %arg9[%c0_86, %c16, %c0_87], %185 {strides = array<i32>} : memref<1x24x128xbf16, #tpu.memory_space<vmem>>, vector<1x8x128xbf16>,
    return
  }
  func.func @transform_0(%arg0: i32, %arg1: i32) -> (i32, i32, i32) {
    %c0_i32 = arith.constant 0 : i32
    %c0_i32_0 = arith.constant 0 : i32
    return %arg0, %c0_i32, %arg1 : i32, i32, i32
  }
  func.func @transform_1(%arg0: i32, %arg1: i32) -> (i32, i32, i32) {
    %c1_i32 = arith.constant 1 : i32
    %0 = arith.muli %arg1, %c1_i32 : i32
    %c1_i32_0 = arith.constant 1 : i32
    %1 = arith.subi %0, %c1_i32_0 : i32
    %c0_i32 = arith.constant 0 : i32
    %2 = arith.maxsi %1, %c0_i32 : i32
    %c0_i32_1 = arith.constant 0 : i32
    %c0_i32_2 = arith.constant 0 : i32
    return %arg0, %c0_i32_1, %2 : i32, i32, i32
  }
  func.func @transform_2(%arg0: i32, %arg1: i32) -> (i32, i32, i32) {
    %c1_i32 = arith.constant 1 : i32
    %0 = arith.addi %arg1, %c1_i32 : i32
    %c1_i32_0 = arith.constant 1 : i32
    %1 = arith.muli %0, %c1_i32_0 : i32
    %c1_i32_1 = arith.constant 1 : i32
    %2 = arith.minsi %1, %c1_i32_1 : i32
    %c0_i32 = arith.constant 0 : i32
    %c0_i32_2 = arith.constant 0 : i32
    return %arg0, %c0_i32, %2 : i32, i32, i32
  }
  func.func @transform_3(%arg0: i32, %arg1: i32) -> (i32, i32) {
    %c0_i32 = arith.constant 0 : i32
    %c0_i32_0 = arith.constant 0 : i32
    %c0_i32_1 = arith.constant 0 : i32
    return %c0_i32, %c0_i32_0 : i32, i32
  }
  func.func @transform_4(%arg0: i32, %arg1: i32) -> (i32, i32, i32) {
    %c0_i32 = arith.constant 0 : i32
    %c0_i32_0 = arith.constant 0 : i32
    %c0_i32_1 = arith.constant 0 : i32
    %c0_i32_2 = arith.constant 0 : i32
    return %c0_i32, %c0_i32_0, %c0_i32_1 : i32, i32, i32
  }
  func.func @transform_5(%arg0: i32, %arg1: i32) -> (i32, i32, i32) {
    %c0_i32 = arith.constant 0 : i32
    %c0_i32_0 = arith.constant 0 : i32
    %c0_i32_1 = arith.constant 0 : i32
    %c0_i32_2 = arith.constant 0 : i32
    return %c0_i32, %c0_i32_0, %c0_i32_1 : i32, i32, i32
  }
  func.func @transform_6(%arg0: i32, %arg1: i32) -> (i32, i32) {
    %c0_i32 = arith.constant 0 : i32
    %c0_i32_0 = arith.constant 0 : i32
    %c0_i32_1 = arith.constant 0 : i32
    return %c0_i32, %c0_i32_0 : i32, i32
  }
  func.func @transform_7(%arg0: i32, %arg1: i32) -> (i32, i32, i32) {
    %c0_i32 = arith.constant 0 : i32
    %c0_i32_0 = arith.constant 0 : i32
    return %arg0, %c0_i32, %arg1 : i32, i32, i32
  }
}

</mosaic_0001>

<bundles_post_ra>
// kernel: tpu_custom_call.1
= control target key start
LH: loop header
LB: loop body
LE: loop exit
PB: predicated region body
PF: predicated region fallthrough
CT: control target
= control target key end

     0   :  { %12 = vsyncpa [#allocation4], 0  ;;  %s2849_s0 = inlined_call_operand.vmem [shape: bf16[2,8,256], index: 0, kind: input, shape index: {}]   ;;  %s2850_s1 = inlined_call_operand.vmem [shape: bf16[2,8,256], index: 1, kind: input, shape index: {}]   ;;  %s2851_s2 = inlined_call_operand.vmem [shape: bf16[2,8,256], index: 2, kind: input, shape index: {}]   ;;  %s2852_s3 = inlined_call_operand.vmem [shape: bf16[16,8], index: 3, kind: input, shape index: {}]   ;;  %s2853_s4 = inlined_call_operand.vmem [shape: bf16[4,48,16], index: 4, kind: input, shape index: {}]   ;;  %s2854_s5 = inlined_call_operand.vmem [shape: f32[5,16,1], index: 5, kind: input, shape index: {}]   ;;  %s2855_s6 = inlined_call_operand.vmem [shape: s32[2,384], index: 6, kind: input, shape index: {}]   ;;  %s2856_s7 = inlined_call_operand.hbm [shape: bf16[2,24,256], index: 7, kind: output, shape index: {}]  }
   0x1   :  { %14 = vsyncpa [#allocation4 + $0x1], 0  ;;  %s2185_s24 = smov 0   ;;  %s2187_s25 = smov 0  }
   0x2   :  { %s2189_s26 = smov 0   ;;  %s2191_s27 = smov 0  }
   0x3   :  { %s2193_s28 = smov 0   ;;  %s2195_s29 = smov 0  }
   0x4   :  { %s2197_s30 = smov 0   ;;  %s2199_s8 = smov 0  }
   0x5 LB: > { %2861 = sst [smem:[#allocation6_spill]] %s2120_s29  ;;  %s1743_s9 = sadd.s32 4294967295, %s2128_s8   ;;  %s2128_s8 = sphi %s2199_s8, %s20_s8   ;;  %s2124_s30 = sphi %s2197_s30, %s2910_s30   ;;  %s2120_s29 = sphi %s2195_s29, %s2909_s29   ;;  %s2116_s28 = sphi %s2193_s28, %s2908_s28   ;;  %s2112_s27 = sphi %s2191_s27, %s2907_s27   ;;  %s2108_s26 = sphi %s2189_s26, %s2913_s26   ;;  %s2104_s25 = sphi %s2187_s25, %s2912_s25   ;;  %s2100_s24 = sphi %s2185_s24, %s2911_s24  }
   0x6   : > { %2862 = sst [smem:[#allocation7_spill]] %s2124_s30  ;;  %s1744_s10 = sadd.s32 4294967294, %s2128_s8  }
   0x7   : > { %s29_s11 = sadd.s32 1, %s2120_s29  ;;  %s32_s12 = sadd.s32 1, %s2124_s30 }
   0x8   : > { %p30_p0 = scmp.ge.s32.totalorder %s29_s11, 2  ;;  %p231_p1 = scmp.ne.s32.totalorder %s2108_s26, %s2104_s25 }
   0x9   : > { %p232_p2 = scmp.eq.s32.totalorder %s1743_s9, 3  ;;  %p237_p5 = scmp.ne.s32.totalorder %s2104_s25, %s2100_s24 }
   0xa   : > { %s2915_s11 = smov (%p30_p0, %s29_s11), 0  ;;  %s2917_s12 = smov (!%p30_p0, %s32_s12), %s2124_s30 }
   0xb   : > { %2863 = sst [smem:[#allocation8_spill]] %s2915_s11  ;;  %s217_s13 = ssub.s32 %s2120_s29, %s2915_s11 }
   0xc   : > { %p2236_p3 = por %p232_p2, %p231_p1  ;;  %p34_p4 = scmp.ge.s32.totalorder %s2917_s12, 2 }
   0xd   : > { %p238_p6 = scmp.eq.s32.totalorder %s1744_s10, 3  ;;  %p1749_p7 = scmp.ge.s32.totalorder %s2128_s8, 1 }
   0xe   : > { %s2919_s12 = smov (%p34_p4, %s2917_s12), 0  ;;  %p313_p9 = scmp.lt.s32.totalorder %s2128_s8, 5 }
   0xf   : > { %2865 = sst [smem:[#allocation9_spill]] %s2919_s12  ;;  %p2245_p8 = por %p238_p6, %p237_p5 }
  0x10   : > { %s216_s16 = ssub.s32 %s2124_s30, %s2919_s12  ;;  %s221_s17 = sadd.s32 1, %s2108_s26 }
  0x11   : > { %s218_s18 = sor.u32 %s217_s13, %s216_s16  ;;  %p314_p10 = pnand %p1749_p7, %p313_p9 }
  0x12   : > { %p219_p11 = scmp.eq.s32.totalorder %s218_s18, 0  ;;  %p370_p12 = scmp.lt.s32.totalorder (!%p314_p10), %s2116_s28, 1 }
  0x13   : > { %317 = sbr.rel (%p314_p10) target bundleno = 1649 (0x671), region = 48  ;;  %p372_p13 = scmp.lt.s32.totalorder (!%p314_p10), %s2112_s27, 1 }
  0x14   : > { %s2254_s19 = scalar_select %p219_p11, %s2108_s26, %s221_s17  }
  0x15   : > { %s1752_s20 = sadd.s32 (!%p314_p10), 4294967295, %s2112_s27  ;;  %s392_s21 = sadd.s32 (!%p314_p10), 1, %s2112_s27 }
  0x16   : > { %p379_p0 = scmp.gt.s32.totalorder (!%p314_p10), %s1752_s20, 0  ;;  %p1753_p1 = scmp.lt.s32.totalorder (!%p314_p10), %s1752_s20, 1 }
  0x17   : > { %p393_p2 = scmp.lt.s32.totalorder (!%p314_p10), %s392_s21, 1 }
  0x18   : > { %v2130_v0 = vmov 0.0   ;;  %v2131_v1 = vmov 0   ;;  %s371_s22 = scalar_select %p370_p12, %s2116_s28, 1  ;;  %vm2132_vm0 = vmmov 0   ;;  %v424_v2 = vld [vmem:[%s2854_s5] sm:$0xff]  ;;  %v425_v3 = vld [vmem:[%s2854_s5 + $0x8] sm:$0xff] }
  0x19   : > { %1869 = vmatprep.subr.bf16.mxu1 %v2130_v0  ;;  %495 = vmatprep.mubr.bf16.mxu0 %v2131_v1  ;;  %s373_s10 = scalar_select %p372_p13, %s2112_s27, 1  ;;  %vm453_vm1 = vcmask 1043456   ;;  %v2023_v13 = vld [vmem:[%s2852_s3] sm:$0xff]   ;;  %vm449_vm2 = vcmask 64512   ;;  %v1781_v14 = vld [vmem:[%s2854_s5 + $0x10] sm:$0xff]  ;;  %v1782_v15 = vld [vmem:[%s2854_s5 + $0x18] sm:$0xff] }
  0x1a   : > { %1871 = vmatprep.mubr.msk.bf16.mxu1 %vm2132_vm0, %v2130_v0  ;;  %2018 = vset.pattern.permute.xlu0 %v2131_v1  ;;  %s1750_s17 = sshll.u32 %s371_s22, 1  ;;  %s2921_s20 = smov (!%p379_p0, %s1752_s20), 0  ;;  %v2024_v39 = vld [vmem:[%s2853_s4] sm:$0xff]   ;;  %vm590_vm3 = vcmask 130048   ;;  %v2025_v42 = vld [vmem:[%s2853_s4 + $0x8] sm:$0xff]   ;;  %v2026_v43 = vld [vmem:[%s2853_s4 + $0x10] sm:$0xff]  }
  0x1b   : > { %428 = vperm.xlu0 %2018, %v424_v2   ;;  %2019 = vset.pattern.permute.xlu1 %v2131_v1  ;;  %s375_s18 = sadd.s32 %s1750_s17, %s373_s10  ;;  %s2923_s21 = smov (!%p393_p2, %s392_s21), 1 }
  0x1c   : > { %s1751_s12 = sshll.u32 %s375_s18, 2  ;;  %s2925_s20 = smov (!%p1753_p1, %s2921_s20), 1  ;;  %722 = vperm.xlu1 %2019, %v1781_v14  }
  0x1d   : > { %s2277_s29 = scalar_lea.vmem %s2849_s0, %s1751_s12  ;;  %s2927_s21 = smov (!%p393_p2, %s2923_s21), 1 }
  0x1e   : > { %v409_v4 = vld [vmem:[%s2277_s29] sm:$0xf]  ;;  %s386_s23 = sadd.s32 %s2925_s20, %s1750_s17  ;;  %s400_s9 = sadd.s32 %s1750_s17, %s2927_s21 }
  0x1f   : > { %433 = vperm.xlu0 %2018, %v425_v3   ;;  %410 = vst [vmem:[#allocation2 + $0x4] sm:$0xf] %v409_v4  ;;  %s1759_s22 = sshll.u32 %s386_s23, 2  ;;  %s1764_s18 = sshll.u32 %s400_s9, 2 }
  0x20   : > { %s388_s16 = scalar_lea.vmem %s2850_s1, %s1759_s22  ;;  %s402_s12 = scalar_lea.vmem %s2851_s2, %s1764_s18  ;;  %727 = vperm.xlu1 %2019, %v1782_v15  }
  0x21   : > { %v407_v5 = vld [vmem:[%s388_s16] sm:$0xf]  ;;  %s2134_s20 = smov 112   ;;  %s1766_s9 = sshll.u32 %s2112_s27, 3 }
  0x22   : > { %408 = vst [vmem:[#allocation2] sm:$0xf] %v407_v5  ;;  %v411_v6 = vld [vmem:[%s402_s12] sm:$0xf]  ;;  %s2133_s12 = smov 16   ;;  %s1767_s10 = sadd.s32 4294967288, %s1766_s9 }
  0x23   : > { %412 = vst [vmem:[#allocation2 + $0x8] sm:$0xf] %v411_v6  ;;  %v1783_v6 = vld [vmem:[%s2854_s5 + $0x20] sm:$0xff]  ;;  %s2135_s17 = smov 1   ;;  %s2136_s23 = smov 127  }
  0x24   : > { %s2138_s22 = smov 96  }
  0x29   : > { %v413_v7 = vld [vmem:[#allocation2] sm:$0xff] }
  0x2a   : > { %v1770_v8 = vcombine.high %v413_v7, %v413_v7  ;;  %v1769_v9 = vcombine.low %v413_v7, %v413_v7  ;;  %v2022_v10 = vld [vmem:[#allocation2 + $0x8] ss:$0 sps:$4 sm:$0xff]  }
  0x2b   : > { %v461_v12 = vsel %vm453_vm1, %v2022_v10, 0  ;;  %v1784_v7 = vld [vmem:[%s2854_s5 + $0x28] sm:$0xff]  ;;  %v420_v10 = vstv %s1767_s10  ;;  %s2140_s10 = smov 126  }
  0x2c   : > { %1772 = vmatprep.subr.msk.bf16.mxu0 %vm453_vm1, %v1770_v8  ;;  %v455_v11 = vsel %vm453_vm1, %v1769_v9, 0  ;;  %1870 = vmatpush3.bf16.msra.mxu1 %v461_v12  ;;  %v415_v9 = vld [vmem:[%s2855_s6] ss:$2 sm:$0x7] }
  0x2d   : > { %478 = vmatpush1.bf16.msra.mxu0 %v455_v11  ;;  %1875 = vmatprep.subr.bf16.mxu1 %v2130_v0  ;;  %v2348_v11 = vadd.s32 %v420_v10, %v415_v9 }
  0x2f   : > { %1872 = vmatmul.mubr.msk.bf16.vlgmr.msra.gmra.mxu1 %vm449_vm2, %v2023_v13  ;;  %v757_v14 = vadd.s32 4294967295, %v2348_v11  ;;  %v808_v15 = vadd.s32 1, %v2348_v11 }
  0x30   : > { %1773 = vmatmul.mubr.msk.bf16.vlgmr.msra.gmra.mxu0 %vm449_vm2, %v2023_v13  ;;  %1877 = vmatprep.mubr.msk.bf16.mxu1 %vm2132_vm0, %v2130_v0 }
  0x31   : > { %632 = vmatprep.mubr.bf16.mxu0 %v2131_v1  ;;  %vm758_vm4 = vcmp.ge.s32.totalorder %v757_v14, 0  ;;  %vm759_vm5 = vcmp.lt.s32.totalorder %v757_v14, 16  ;;  %vm809_vm6 = vcmp.ge.s32.totalorder %v808_v15, 0  ;;  %vm810_vm7 = vcmp.lt.s32.totalorder %v808_v15, 16 }
  0x32   : > { %vm760_vm8 = vmand %vm758_vm4, %vm759_vm5 }
  0x33   : > { %vm811_vm9 = vmand %vm809_vm6, %vm810_vm7 }
  0x96   : > { %v429_v16 = vpop.permute.xlu0 %428 }
  0x97   : > { %v2343_v8 = vpop.permute.xlu1 %722 }
  0x9a   : > { %v434_v22 = vpop.permute.xlu0 %433 }
  0x9b   : > { %v2350_v13 = vpop.permute.xlu1 %727 }
  0xef   : > { %v540_v18 = vpop.f32.mrf.mxu1 }
  0xf0   : > { %v497_v17 = vpop.f32.mrf.mxu0  ;;  %v541_v21 = vadd.f32 %v540_v18, %v429_v16 }
  0xf1   : > { %v1873_v20 = vpop.f32.mrf.mxu1  ;;  %v498_v28 = vadd.f32 %v497_v17, %v429_v16  ;;  %v748_v17 = vlaneseq }
  0xf2   : > { %v499_v19 = vpop.f32.mrf.mxu0  ;;  %v549_v31 = vmax.f32 %v541_v21, 0.0 }
  0xf3   : > { %v543_v24 = vpop.f32.mrf.mxu1  ;;  %v500_v25 = vadd.f32 %v499_v19, %v429_v16  ;;  %v547_v38 = vmax.f32 %v498_v28, 0.0  ;;  %v763_v19 = vshrl.u32 %v748_v17, 7 }
  0xf4   : > { %v501_v23 = vpop.f32.mrf.mxu0  ;;  %v544_v27 = vadd.f32 %v543_v24, %v434_v22 }
  0xf5   : > { %v502_v26 = vadd.f32 %v501_v23, %v434_v22  ;;  %v1874_v30 = vpop.f32.mrf.mxu1  ;;  %v548_v35 = vmax.f32 %v500_v25, 0.0  ;;  %v2354_v20 = vsub.s32 1, %v763_v19  ;;  %v2356_v23 = vsub.s32 0, %v763_v19 }
  0xf6   : > { %v503_v29 = vpop.f32.mrf.mxu0  ;;  %v552_v32 = vmax.f32 %v544_v27, 0.0  ;;  %v2358_v24 = vsub.s32 2, %v763_v19  ;;  %v2360_v25 = vand.u32 127, %v748_v17  ;;  %v812_v27 = vsel %vm811_vm9, 1, %v2131_v1 }
  0xf7   : > { %v504_v33 = vadd.f32 %v503_v29, %v434_v22  ;;  %v550_v34 = vmax.f32 %v502_v26, 0.0  ;;  %v761_v26 = vsel %vm760_vm8, 1, %v2131_v1 }
  0xf8   : > { %v574_v36 = vpack.c.bf16 %v552_v32, %v549_v31  ;;  %v769_v28 = vrot.slane %v761_v26, %v2354_v20  ;;  %v765_v30 = vrot.slane %v761_v26, %v2356_v23  ;;  %v773_v31 = vrot.slane %v761_v26, %v2358_v24 }
  0xf9   : > { %v551_v37 = vmax.f32 %v504_v33, 0.0  ;;  %v572_v41 = vpack.c.bf16 %v550_v34, %v547_v38  ;;  %v820_v33 = vrot.slane %v812_v27, %v2354_v20  ;;  %vm750_vm10 = vcmp.lt.s32.totalorder %v2360_v25, 16 }
  0xfa   : > { %1876 = vmatpush3.bf16.msra.mxu1 %v574_v36  ;;  %vm2369_vm11 = vcmp.eq.s32.totalorder %v769_v28, 1  ;;  %vm801_vm12 = vcmp.lt.s32.totalorder %v2360_v25, 112  ;;  %v816_v36 = vrot.slane %v812_v27, %v2356_v23  ;;  %v824_v38 = vrot.slane %v812_v27, %v2358_v24 }
  0xfb   : > { %v573_v40 = vpack.c.bf16 %v551_v37, %v548_v35  ;;  %1889 = vmatprep.subr.bf16.mxu1 %v2130_v0  ;;  %vm2380_vm13 = vcmp.eq.s32.totalorder %v765_v30, 1  ;;  %vm2386_vm14 = vcmp.eq.s32.totalorder %v773_v31, 1  ;;  %vm2390_vm15 = vcmp.eq.s32.totalorder %v820_v33, 1 }
  0xfc   : > { %vm2408_vm1 = vcmp.eq.s32.totalorder %v816_v36, 1  ;;  %vm2418_vm2 = vcmp.eq.s32.totalorder %v824_v38, 1  ;;  %v2028_v36 = vld [vmem:[%s2853_s4 + $0x20] sm:$0xff]  }
  0xfd   : > { %614 = vmatprep.subr.bf16.mxu0 %v573_v40  ;;  %1878 = vmatmul.mubr.msk.bf16.vlgmr.msra.gmra.mxu1 %vm590_vm3, %v2024_v39 }
  0xfe   : > { %615 = vmatpush1.bf16.msra.mxu0 %v572_v41  ;;  %1881 = vmatprep.mubr.msk.bf16.mxu1 %vm2132_vm0, %v2130_v0 }
 0x101   : > { %1788 = vmatmul.mubr.msk.bf16.vlgmr.msra.gmra.mxu0 %vm590_vm3, %v2024_v39 }
 0x102   : > { %642 = vmatprep.mubr.bf16.mxu0 %v2131_v1 }
 0x105   : > { %1882 = vmatmul.mubr.msk.bf16.gmra.mxu1 %vm590_vm3, %v2025_v42 }
 0x106   : > { %1885 = vmatprep.mubr.msk.bf16.mxu1 %vm2132_vm0, %v2130_v0 }
 0x109   : > { %1789 = vmatmul.mubr.msk.bf16.gmra.mxu0 %vm590_vm3, %v2025_v42 }
 0x10a   : > { %652 = vmatprep.mubr.bf16.mxu0 %v2131_v1 }
 0x10d   : > { %1886 = vmatmul.mubr.msk.bf16.gmra.mxu1 %vm590_vm3, %v2026_v43 }
 0x10e   : > { %1891 = vmatprep.mubr.msk.bf16.mxu1 %vm2132_vm0, %v2130_v0 }
 0x111   : > { %1790 = vmatmul.mubr.msk.bf16.gmra.mxu0 %vm590_vm3, %v2026_v43 }
 0x112   : > { %899 = vmatprep.mubr.bf16.mxu0 %v2131_v1 }
 0x1bd   : > { %v697_v44 = vpop.f32.mrf.mxu1 }
 0x1be   : > { %744 = vrot.lane.b32.xlu0 %v697_v44, %s2133_s12 }
 0x1bf   : > { %v1879_v45 = vpop.f32.mrf.mxu1 }
 0x1c1   : > { %v634_v46 = vpop.f32.mrf.mxu0  ;;  %v700_v47 = vpop.f32.mrf.mxu1 }
 0x1c2   : > { %746 = vrot.lane.b32.xlu1 %v700_v47, %s2133_s12  ;;  %736 = vrot.lane.b32.xlu0 %v634_v46, %s2133_s12 }
 0x1c3   : > { %v636_v48 = vpop.f32.mrf.mxu0  ;;  %v1880_v49 = vpop.f32.mrf.mxu1 }
 0x1c5   : > { %v638_v50 = vpop.f32.mrf.mxu0  ;;  %v2324_v51 = vpop.f32.mrf.mxu1 }
 0x1c6   : > { %740 = vrot.lane.b32.xlu0 %v636_v48, %s2133_s12  ;;  %738 = vrot.lane.b32.xlu1 %v638_v50, %s2133_s12  ;;  %v732_v9 = vadd.f32 %v2343_v8, %v2324_v51 }
 0x1c7   : > { %v640_v52 = vpop.f32.mrf.mxu0  ;;  %v1883_v53 = vpop.f32.mrf.mxu1 }
 0x1c9   : > { %v2326_v54 = vpop.f32.mrf.mxu0  ;;  %v2328_v55 = vpop.f32.mrf.mxu1 }
 0x1ca   : > { %742 = vrot.lane.b32.xlu1 %v640_v52, %s2133_s12  ;;  %v730_v49 = vadd.f32 %v2343_v8, %v2326_v54  ;;  %v735_v15 = vadd.f32 %v2350_v13, %v2328_v55 }
 0x1cb   : > { %v2330_v56 = vpop.f32.mrf.mxu0  ;;  %v1884_v57 = vpop.f32.mrf.mxu1 }
 0x1cc   : > { %v731_v50 = vadd.f32 %v2343_v8, %v2330_v56 }
 0x1cd   : > { %v2332_v58 = vpop.f32.mrf.mxu0  ;;  %v713_v59 = vpop.f32.mrf.mxu1 }
 0x1ce   : > { %797 = vrot.lane.b32.xlu0 %v713_v59, %s2134_s20  ;;  %v733_v10 = vadd.f32 %v2350_v13, %v2332_v58 }
 0x1cf   : > { %v2334_v60 = vpop.f32.mrf.mxu0  ;;  %v1887_v61 = vpop.f32.mrf.mxu1 }
 0x1d0   : > { %v734_v57 = vadd.f32 %v2350_v13, %v2334_v60 }
 0x1d1   : > { %v654_v62 = vpop.f32.mrf.mxu0  ;;  %v716_v63 = vpop.f32.mrf.mxu1 }
 0x1d2   : > { %799 = vrot.lane.b32.xlu1 %v716_v63, %s2134_s20 }
 0x1d3   : > { %v656_v2 = vpop.f32.mrf.mxu0  ;;  %v1888_v3 = vpop.f32.mrf.mxu1 }
 0x1d4   : > { %793 = vrot.lane.b32.xlu0 %v656_v2, %s2134_s20 }
 0x1d5   : > { %v658_v4 = vpop.f32.mrf.mxu0 }
 0x1d7   : > { %v660_v5 = vpop.f32.mrf.mxu0 }
 0x1d8   : > { %789 = vrot.lane.b32.xlu0 %v654_v62, %s2134_s20  ;;  %795 = vrot.lane.b32.xlu1 %v660_v5, %s2134_s20 }
 0x1dc   : > { %989 = vperm.xlu0 %2018, %v1783_v6   ;;  %791 = vrot.lane.b32.xlu1 %v658_v4, %s2134_s20  ;;  %s2141_s20 = smov [#allocation3]  }
 0x1dd   : > { %s2040_s21 = sshll.u32 %s2141_s20, 4  ;;  %s2041_s21 = int_to_ptr.vmem [resolvable:$false] %s2040_s21 }
 0x1e0   : > { %994 = vperm.xlu1 %2019, %v1784_v7  }
 0x230   : > { %v745_v12 = vpop.permute.xlu0 %744 }
 0x234   : > { %v747_v16 = vpop.permute.xlu1 %746  ;;  %v737_v18 = vpop.permute.xlu0 %736 }
 0x235   : > { %v755_v40 = vsel %vm750_vm10, %v745_v12, %v737_v18 }
 0x236   : > { %v777_v59 = vsel %vm2380_vm13, %v755_v40, 0.0 }
 0x238   : > { %v739_v21 = vpop.permute.xlu1 %738  ;;  %v741_v22 = vpop.permute.xlu0 %740 }
 0x239   : > { %v753_v35 = vsel %vm750_vm10, %v737_v18, %v741_v22  ;;  %v751_v45 = vsel %vm750_vm10, %v741_v22, %v745_v12  ;;  %v756_v47 = vsel %vm750_vm10, %v747_v16, %v739_v21 }
 0x23a   : > { %v778_v46 = vsel %vm2369_vm11, %v753_v35, 0.0  ;;  %v779_v56 = vsel %vm2386_vm14, %v751_v45, 0.0  ;;  %v780_v63 = vsel %vm2380_vm13, %v756_v47, 0.0  ;;  %v2027_v35 = vld [vmem:[%s2853_s4 + $0x18] sm:$0xff]  }
 0x23b   : > { %v784_v62 = vadd.f32 %v778_v46, %v731_v50  ;;  %v785_v19 = vadd.f32 %v779_v56, %v732_v9 }
 0x23c   : > { %v743_v32 = vpop.permute.xlu1 %742 }
 0x23d   : > { %v754_v37 = vsel %vm750_vm10, %v739_v21, %v743_v32  ;;  %v752_v61 = vsel %vm750_vm10, %v743_v32, %v747_v16  ;;  %v783_v16 = vadd.f32 %v777_v59, %v730_v49  ;;  %v786_v21 = vadd.f32 %v780_v63, %v733_v10 }
 0x23e   : > { %v781_v52 = vsel %vm2369_vm11, %v754_v37, 0.0  ;;  %v782_v12 = vsel %vm2386_vm14, %v752_v61, 0.0  ;;  %v2029_v37 = vld [vmem:[%s2853_s4 + $0x28] sm:$0xff]   ;;  %vm1015_vm10 = vcmp.lt.s32.totalorder %v2360_v25, 1 }
 0x23f   : > { %v787_v4 = vadd.f32 %v781_v52, %v734_v57  ;;  %v788_v22 = vadd.f32 %v782_v12, %v735_v15 }
 0x240   : > { %v798_v29 = vpop.permute.xlu0 %797 }
 0x244   : > { %v800_v42 = vpop.permute.xlu1 %799 }
 0x246   : > { %v794_v44 = vpop.permute.xlu0 %793 }
 0x247   : > { %v802_v48 = vsel %vm801_vm12, %v794_v44, %v798_v29 }
 0x248   : > { %v829_v60 = vsel %vm2390_vm15, %v802_v48, 0.0 }
 0x249   : > { %v835_v17 = vadd.f32 %v829_v60, %v784_v62 }
 0x24a   : > { %v790_v2 = vpop.permute.xlu0 %789  ;;  %v796_v3 = vpop.permute.xlu1 %795 }
 0x24b   : > { %v804_v5 = vsel %vm801_vm12, %v790_v2, %v794_v44  ;;  %v806_v6 = vsel %vm801_vm12, %v798_v29, %v790_v2  ;;  %v803_v7 = vsel %vm801_vm12, %v796_v3, %v800_v42 }
 0x24c   : > { %v832_v14 = vsel %vm2390_vm15, %v803_v7, 0.0  ;;  %v828_v51 = vsel %vm2408_vm1, %v804_v5, 0.0  ;;  %v830_v58 = vsel %vm2418_vm2, %v806_v6, 0.0  ;;  %v2500_v6 = vld [vmem:[%s2855_s6 + $0x1] ss:$2 sm:$0x7] }
 0x24d   : > { %v838_v18 = vadd.f32 %v832_v14, %v787_v4  ;;  %v834_v29 = vadd.f32 %v828_v51, %v783_v16  ;;  %v836_v30 = vadd.f32 %v830_v58, %v785_v19  ;;  %v1816_v4 = vld [vmem:[%s2854_s5 + $0x38] sm:$0xff]  ;;  %v1022_v10 = vadd.s32 4294967295, %v2500_v6 }
 0x24e   : > { %v792_v8 = vpop.permute.xlu1 %791  ;;  %v1073_v12 = vadd.s32 1, %v2500_v6 }
 0x24f   : > { %v805_v26 = vsel %vm801_vm12, %v792_v8, %v796_v3  ;;  %v807_v27 = vsel %vm801_vm12, %v800_v42, %v792_v8  ;;  %v841_v55 = vpack.c.bf16 %v838_v18, %v835_v17  ;;  %v1815_v3 = vld [vmem:[%s2854_s5 + $0x30] sm:$0xff]  ;;  %vm1023_vm4 = vcmp.ge.s32.totalorder %v1022_v10, 0 }
 0x250   : > { %v831_v13 = vsel %vm2408_vm1, %v805_v26, 0.0  ;;  %v833_v28 = vsel %vm2418_vm2, %v807_v27, 0.0  ;;  %vm1024_vm5 = vcmp.lt.s32.totalorder %v1022_v10, 16  ;;  %vm1074_vm6 = vcmp.ge.s32.totalorder %v1073_v12, 0 }
 0x251   : > { %v837_v31 = vadd.f32 %v831_v13, %v786_v21  ;;  %v839_v32 = vadd.f32 %v833_v28, %v788_v22  ;;  %881 = vmatprep.subr.bf16.mxu0 %v841_v55  ;;  %vm1075_vm7 = vcmp.lt.s32.totalorder %v1073_v12, 16  ;;  %vm1025_vm8 = vmand %vm1023_vm4, %vm1024_vm5  ;;  %vm1066_vm12 = vcmp.lt.s32.totalorder %v2360_v25, 127 }
 0x252   : > { %vm1076_vm9 = vmand %vm1074_vm6, %vm1075_vm7  ;;  %v1026_v17 = vsel %vm1025_vm8, 1, %v2131_v1 }
 0x253   : > { %v840_v33 = vpack.c.bf16 %v837_v31, %v834_v29  ;;  %v842_v34 = vpack.c.bf16 %v839_v32, %v836_v30  ;;  %v1077_v19 = vsel %vm1076_vm9, 1, %v2131_v1  ;;  %v1034_v21 = vrot.slane %v1026_v17, %v2354_v20 }
 0x254   : > { %v1030_v51 = vrot.slane %v1026_v17, %v2356_v23  ;;  %v1085_v8 = vrot.slane %v1077_v19, %v2354_v20  ;;  %v1038_v22 = vrot.slane %v1026_v17, %v2358_v24  ;;  %v1081_v30 = vrot.slane %v1077_v19, %v2356_v23 }
 0x255   : > { %882 = vmatpush1.bf16.msra.mxu0 %v840_v33  ;;  %1890 = vmatpush3.bf16.msra.mxu1 %v842_v34  ;;  %vm2513_vm11 = vcmp.eq.s32.totalorder %v1034_v21, 1  ;;  %v1089_v31 = vrot.slane %v1077_v19, %v2358_v24  ;;  %v2031_v34 = vld [vmem:[%s2853_s4 + $0x38] sm:$0xff]  }
 0x256   : > { %1903 = vmatprep.subr.bf16.mxu1 %v2130_v0  ;;  %vm2522_vm13 = vcmp.eq.s32.totalorder %v1030_v51, 1  ;;  %vm2526_vm14 = vcmp.eq.s32.totalorder %v1085_v8, 1  ;;  %vm2534_vm15 = vcmp.eq.s32.totalorder %v1038_v22, 1  ;;  %vm2555_vm1 = vcmp.eq.s32.totalorder %v1081_v30, 1 }
 0x257   : > { %v990_v5 = vpop.permute.xlu0 %989  ;;  %vm2559_vm2 = vcmp.eq.s32.totalorder %v1089_v31, 1 }
 0x258   : > { %1797 = vmatmul.mubr.msk.bf16.vlgmr.msra.gmra.mxu0 %vm590_vm3, %v2027_v35  ;;  %1892 = vmatmul.mubr.msk.bf16.vlgmr.msra.gmra.mxu1 %vm590_vm3, %v2027_v35 }
 0x259   : > { %909 = vmatprep.mubr.bf16.mxu0 %v2131_v1  ;;  %1895 = vmatprep.mubr.msk.bf16.mxu1 %vm2132_vm0, %v2130_v0 }
 0x25b   : > { %v2502_v7 = vpop.permute.xlu1 %994 }
 0x260   : > { %1798 = vmatmul.mubr.msk.bf16.gmra.mxu0 %vm590_vm3, %v2028_v36  ;;  %1896 = vmatmul.mubr.msk.bf16.gmra.mxu1 %vm590_vm3, %v2028_v36 }
 0x261   : > { %919 = vmatprep.mubr.bf16.mxu0 %v2131_v1  ;;  %1899 = vmatprep.mubr.msk.bf16.mxu1 %vm2132_vm0, %v2130_v0 }
 0x268   : > { %1799 = vmatmul.mubr.msk.bf16.gmra.mxu0 %vm590_vm3, %v2029_v37  ;;  %1900 = vmatmul.mubr.msk.bf16.gmra.mxu1 %vm590_vm3, %v2029_v37 }
 0x269   : > { %1190 = vmatprep.mubr.bf16.mxu0 %v2131_v1  ;;  %1905 = vmatprep.mubr.msk.bf16.mxu1 %vm2132_vm0, %v2130_v0 }
 0x318   : > { %v901_v38 = vpop.f32.mrf.mxu0  ;;  %v964_v39 = vpop.f32.mrf.mxu1 }
 0x319   : > { %1011 = vrot.lane.b32.xlu0 %v964_v39, %s2135_s17 }
 0x31a   : > { %v903_v40 = vpop.f32.mrf.mxu0  ;;  %v1893_v41 = vpop.f32.mrf.mxu1 }
 0x31c   : > { %v905_v42 = vpop.f32.mrf.mxu0  ;;  %v967_v43 = vpop.f32.mrf.mxu1 }
 0x31d   : > { %1013 = vrot.lane.b32.xlu1 %v967_v43, %s2135_s17  ;;  %1003 = vrot.lane.b32.xlu0 %v901_v38, %s2135_s17 }
 0x31e   : > { %v907_v44 = vpop.f32.mrf.mxu0  ;;  %v1894_v45 = vpop.f32.mrf.mxu1 }
 0x320   : > { %v2481_v46 = vpop.f32.mrf.mxu0  ;;  %v2483_v47 = vpop.f32.mrf.mxu1 }
 0x321   : > { %1007 = vrot.lane.b32.xlu0 %v903_v40, %s2135_s17  ;;  %1005 = vrot.lane.b32.xlu1 %v905_v42, %s2135_s17  ;;  %v997_v42 = vadd.f32 %v990_v5, %v2481_v46 }
 0x322   : > { %v913_v48 = vpop.f32.mrf.mxu0  ;;  %v1897_v49 = vpop.f32.mrf.mxu1 }
 0x323   : > { %v998_v32 = vadd.f32 %v990_v5, %v913_v48 }
 0x324   : > { %v2485_v50 = vpop.f32.mrf.mxu0  ;;  %v2487_v52 = vpop.f32.mrf.mxu1 }
 0x325   : > { %1009 = vrot.lane.b32.xlu1 %v907_v44, %s2135_s17  ;;  %s2139_s17 = smov 2  }
 0x326   : > { %v2489_v53 = vpop.f32.mrf.mxu0  ;;  %v1898_v57 = vpop.f32.mrf.mxu1 }
 0x327   : > { %v1001_v43 = vadd.f32 %v2502_v7, %v2489_v53 }
 0x328   : > { %v921_v59 = vpop.f32.mrf.mxu0  ;;  %v980_v61 = vpop.f32.mrf.mxu1 }
 0x329   : > { %1062 = vrot.lane.b32.xlu0 %v980_v61, %s2136_s23 }
 0x32a   : > { %v923_v54 = vpop.f32.mrf.mxu0  ;;  %v1901_v56 = vpop.f32.mrf.mxu1 }
 0x32c   : > { %v925_v62 = vpop.f32.mrf.mxu0  ;;  %v983_v63 = vpop.f32.mrf.mxu1 }
 0x32d   : > { %1064 = vrot.lane.b32.xlu1 %v983_v63, %s2136_s23  ;;  %1058 = vrot.lane.b32.xlu0 %v923_v54, %s2136_s23 }
 0x32e   : > { %v1902_v60 = vpop.f32.mrf.mxu1  ;;  %v927_v2 = vpop.f32.mrf.mxu0 }
 0x331   : > { %1054 = vrot.lane.b32.xlu0 %v921_v59, %s2136_s23  ;;  %1060 = vrot.lane.b32.xlu1 %v927_v2, %s2136_s23 }
 0x335   : > { %1280 = vperm.xlu0 %2018, %v1815_v3   ;;  %1056 = vrot.lane.b32.xlu1 %v925_v62, %s2136_s23  ;;  %v999_v3 = vadd.f32 %v990_v5, %v2483_v47  ;;  %v1002_v47 = vadd.f32 %v2502_v7, %v2487_v52  ;;  %s2137_s23 = smov 32  }
 0x339   : > { %1285 = vperm.xlu1 %2019, %v1816_v4   ;;  %v1000_v4 = vadd.f32 %v2502_v7, %v2485_v50 }
 0x38b   : > { %v1012_v9 = vpop.permute.xlu0 %1011 }
 0x38f   : > { %v1014_v14 = vpop.permute.xlu1 %1013  ;;  %v1004_v15 = vpop.permute.xlu0 %1003 }
 0x390   : > { %v1020_v33 = vsel %vm1015_vm10, %v1012_v9, %v1004_v15 }
 0x391   : > { %v1042_v45 = vsel %vm2522_vm13, %v1020_v33, 0.0  ;;  %v2030_v33 = vld [vmem:[%s2853_s4 + $0x30] sm:$0xff]  }
 0x392   : > { %v1048_v12 = vadd.f32 %v1042_v45, %v997_v42 }
 0x393   : > { %v1006_v16 = vpop.permute.xlu1 %1005  ;;  %v1008_v18 = vpop.permute.xlu0 %1007 }
 0x394   : > { %v1018_v55 = vsel %vm1015_vm10, %v1004_v15, %v1008_v18  ;;  %v1016_v38 = vsel %vm1015_vm10, %v1008_v18, %v1012_v9  ;;  %v1021_v39 = vsel %vm1015_vm10, %v1014_v14, %v1006_v16 }
 0x395   : > { %v1043_v35 = vsel %vm2513_vm11, %v1018_v55, 0.0  ;;  %v1044_v46 = vsel %vm2534_vm15, %v1016_v38, 0.0  ;;  %v1045_v53 = vsel %vm2522_vm13, %v1021_v39, 0.0 }
 0x396   : > { %v1049_v48 = vadd.f32 %v1043_v35, %v998_v32  ;;  %v1050_v5 = vadd.f32 %v1044_v46, %v999_v3  ;;  %v1051_v17 = vadd.f32 %v1045_v53, %v1000_v4  ;;  %v2032_v35 = vld [vmem:[%s2853_s4 + $0x40] sm:$0xff]  }
 0x397   : > { %v1010_v58 = vpop.permute.xlu1 %1009  ;;  %v1817_v4 = vld [vmem:[%s2854_s5 + $0x40] sm:$0xff] }
 0x398   : > { %v1019_v13 = vsel %vm1015_vm10, %v1006_v16, %v1010_v58  ;;  %v1017_v59 = vsel %vm1015_vm10, %v1010_v58, %v1014_v14  ;;  %vm1306_vm10 = vcmp.lt.s32.totalorder %v2360_v25, 32 }
 0x399   : > { %v1046_v40 = vsel %vm2513_vm11, %v1019_v13, 0.0  ;;  %v1047_v14 = vsel %vm2534_vm15, %v1017_v59, 0.0 }
 0x39a   : > { %v1052_v61 = vadd.f32 %v1046_v40, %v1001_v43  ;;  %v1053_v58 = vadd.f32 %v1047_v14, %v1002_v47 }
 0x39b   : > { %v1063_v26 = vpop.permute.xlu0 %1062 }
 0x39f   : > { %v1059_v36 = vpop.permute.xlu0 %1058  ;;  %v1065_v37 = vpop.permute.xlu1 %1064 }
 0x3a0   : > { %v1067_v41 = vsel %vm1066_vm12, %v1059_v36, %v1063_v26 }
 0x3a1   : > { %v1094_v44 = vsel %vm2526_vm14, %v1067_v41, 0.0 }
 0x3a2   : > { %v1100_v62 = vadd.f32 %v1094_v44, %v1049_v48 }
 0x3a3   : > { %v1055_v54 = vpop.permute.xlu0 %1054  ;;  %v1061_v56 = vpop.permute.xlu1 %1060 }
 0x3a4   : > { %v1069_v63 = vsel %vm1066_vm12, %v1055_v54, %v1059_v36  ;;  %v1071_v60 = vsel %vm1066_vm12, %v1063_v26, %v1055_v54  ;;  %v1068_v2 = vsel %vm1066_vm12, %v1061_v56, %v1065_v37  ;;  %v1106_v18 = vmax.f32 %v1100_v62, 0.0 }
 0x3a5   : > { %v1093_v9 = vsel %vm2555_vm1, %v1069_v63, 0.0  ;;  %v1097_v10 = vsel %vm2526_vm14, %v1068_v2, 0.0  ;;  %v1095_v15 = vsel %vm2559_vm2, %v1071_v60, 0.0 }
 0x3a6   : > { %v1103_v16 = vadd.f32 %v1097_v10, %v1052_v61  ;;  %v1099_v19 = vadd.f32 %v1093_v9, %v1048_v12  ;;  %v1101_v8 = vadd.f32 %v1095_v15, %v1050_v5  ;;  %v1818_v9 = vld [vmem:[%s2854_s5 + $0x48] sm:$0xff]  ;;  %v1313_v15 = vadd.s32 4294967294, %v2348_v11 }
 0x3a7   : > { %v1057_v50 = vpop.permute.xlu1 %1056 }
 0x3a8   : > { %v1109_v21 = vmax.f32 %v1103_v16, 0.0  ;;  %v1070_v51 = vsel %vm1066_vm12, %v1057_v50, %v1061_v56  ;;  %v1072_v22 = vsel %vm1066_vm12, %v1065_v37, %v1057_v50  ;;  %v1105_v13 = vmax.f32 %v1099_v19, 0.0 }
 0x3a9   : > { %v1096_v26 = vsel %vm2555_vm1, %v1070_v51, 0.0  ;;  %v1098_v52 = vsel %vm2559_vm2, %v1072_v22, 0.0  ;;  %v1107_v29 = vmax.f32 %v1101_v8, 0.0  ;;  %v1364_v16 = vadd.s32 2, %v2348_v11 }
 0x3aa   : > { %v1102_v7 = vadd.f32 %v1096_v26, %v1051_v17  ;;  %v1132_v27 = vpack.c.bf16 %v1109_v21, %v1106_v18  ;;  %v1104_v55 = vadd.f32 %v1098_v52, %v1053_v58  ;;  %vm1314_vm4 = vcmp.ge.s32.totalorder %v1313_v15, 0  ;;  %v2034_v26 = vld [vmem:[%s2853_s4 + $0x50] sm:$0xff]  }
 0x3ab   : > { %vm1315_vm5 = vcmp.lt.s32.totalorder %v1313_v15, 16  ;;  %vm1365_vm6 = vcmp.ge.s32.totalorder %v1364_v16, 0  ;;  %vm1366_vm7 = vcmp.lt.s32.totalorder %v1364_v16, 16  ;;  %vm1357_vm12 = vcmp.lt.s32.totalorder %v2360_v25, 96 }
 0x3ac   : > { %v1108_v28 = vmax.f32 %v1102_v7, 0.0  ;;  %1172 = vmatprep.subr.bf16.mxu0 %v1132_v27  ;;  %v1110_v30 = vmax.f32 %v1104_v55, 0.0  ;;  %vm1316_vm8 = vmand %vm1314_vm4, %vm1315_vm5 }
 0x3ad   : > { %vm1367_vm9 = vmand %vm1365_vm6, %vm1366_vm7  ;;  %v1317_v18 = vsel %vm1316_vm8, 1, %v2131_v1  ;;  %vm1555_vm8 = vcmp.lt.s32.totalorder %v2360_v25, 2 }
 0x3ae   : > { %v1131_v31 = vpack.c.bf16 %v1108_v28, %v1105_v13  ;;  %v1133_v32 = vpack.c.bf16 %v1110_v30, %v1107_v29  ;;  %v1368_v19 = vsel %vm1367_vm9, 1, %v2131_v1  ;;  %v1325_v21 = vrot.slane %v1317_v18, %v2354_v20 }
 0x3af   : > { %v1321_v51 = vrot.slane %v1317_v18, %v2356_v23  ;;  %v1329_v11 = vrot.slane %v1317_v18, %v2358_v24  ;;  %v1376_v22 = vrot.slane %v1368_v19, %v2354_v20  ;;  %v1372_v7 = vrot.slane %v1368_v19, %v2356_v23 }
 0x3b0   : > { %1173 = vmatpush1.bf16.msra.mxu0 %v1131_v31  ;;  %1904 = vmatpush3.bf16.msra.mxu1 %v1133_v32  ;;  %v1281_v10 = vpop.permute.xlu0 %1280  ;;  %vm2648_vm11 = vcmp.eq.s32.totalorder %v1325_v21, 1  ;;  %v1380_v55 = vrot.slane %v1368_v19, %v2358_v24 }
 0x3b1   : > { %1917 = vmatprep.subr.bf16.mxu1 %v2130_v0  ;;  %vm2659_vm13 = vcmp.eq.s32.totalorder %v1321_v51, 1  ;;  %vm2665_vm14 = vcmp.eq.s32.totalorder %v1329_v11, 1  ;;  %vm2669_vm15 = vcmp.eq.s32.totalorder %v1376_v22, 1  ;;  %vm2685_vm1 = vcmp.eq.s32.totalorder %v1372_v7, 1  ;;  %v2033_v22 = vld [vmem:[%s2853_s4 + $0x48] sm:$0xff]  }
 0x3b2   : > { %vm2694_vm2 = vcmp.eq.s32.totalorder %v1380_v55, 1 }
 0x3b3   : > { %1822 = vmatmul.mubr.msk.bf16.vlgmr.msra.gmra.mxu0 %vm590_vm3, %v2030_v33  ;;  %1906 = vmatmul.mubr.msk.bf16.vlgmr.msra.gmra.mxu1 %vm590_vm3, %v2030_v33 }
 0x3b4   : > { %1200 = vmatprep.mubr.bf16.mxu0 %v2131_v1  ;;  %1909 = vmatprep.mubr.msk.bf16.mxu1 %vm2132_vm0, %v2130_v0  ;;  %v1286_v12 = vpop.permute.xlu1 %1285 }
 0x3bb   : > { %1823 = vmatmul.mubr.msk.bf16.gmra.mxu0 %vm590_vm3, %v2031_v34  ;;  %1910 = vmatmul.mubr.msk.bf16.gmra.mxu1 %vm590_vm3, %v2031_v34 }
 0x3bc   : > { %1210 = vmatprep.mubr.bf16.mxu0 %v2131_v1  ;;  %1913 = vmatprep.mubr.msk.bf16.mxu1 %vm2132_vm0, %v2130_v0 }
 0x3c3   : > { %1824 = vmatmul.mubr.msk.bf16.gmra.mxu0 %vm590_vm3, %v2032_v35  ;;  %1914 = vmatmul.mubr.msk.bf16.gmra.mxu1 %vm590_vm3, %v2032_v35 }
 0x3c4   : > { %1455 = vmatprep.mubr.bf16.mxu0 %v2131_v1  ;;  %1919 = vmatprep.mubr.msk.bf16.mxu1 %vm2132_vm0, %v2130_v0 }
 0x473   : > { %v1192_v36 = vpop.f32.mrf.mxu0  ;;  %v1255_v37 = vpop.f32.mrf.mxu1 }
 0x474   : > { %1302 = vrot.lane.b32.xlu0 %v1255_v37, %s2137_s23 }
 0x475   : > { %v1194_v38 = vpop.f32.mrf.mxu0  ;;  %v1907_v39 = vpop.f32.mrf.mxu1 }
 0x477   : > { %v1196_v40 = vpop.f32.mrf.mxu0  ;;  %v1258_v41 = vpop.f32.mrf.mxu1 }
 0x478   : > { %1304 = vrot.lane.b32.xlu1 %v1258_v41, %s2137_s23  ;;  %1294 = vrot.lane.b32.xlu0 %v1192_v36, %s2137_s23 }
 0x479   : > { %v1198_v42 = vpop.f32.mrf.mxu0  ;;  %v1908_v43 = vpop.f32.mrf.mxu1 }
 0x47b   : > { %v2621_v44 = vpop.f32.mrf.mxu0  ;;  %v2623_v45 = vpop.f32.mrf.mxu1 }
 0x47c   : > { %1298 = vrot.lane.b32.xlu0 %v1194_v38, %s2137_s23  ;;  %1296 = vrot.lane.b32.xlu1 %v1196_v40, %s2137_s23  ;;  %v1288_v35 = vadd.f32 %v1281_v10, %v2621_v44 }
 0x47d   : > { %v2625_v48 = vpop.f32.mrf.mxu0  ;;  %v1911_v49 = vpop.f32.mrf.mxu1 }
 0x47e   : > { %v1289_v36 = vadd.f32 %v1281_v10, %v2625_v48 }
 0x47f   : > { %v2627_v57 = vpop.f32.mrf.mxu0  ;;  %v2629_v46 = vpop.f32.mrf.mxu1 }
 0x480   : > { %1300 = vrot.lane.b32.xlu1 %v1198_v42, %s2137_s23  ;;  %s367_s23 = sand.u32 1, %s2104_s25  }
 0x481   : > { %v2631_v53 = vpop.f32.mrf.mxu0  ;;  %v1912_v59 = vpop.f32.mrf.mxu1  ;;  %s2798_s11 = scalar_lea.sflag [#allocation4], %s367_s23 }
 0x482   : > { %v1292_v39 = vadd.f32 %v1286_v12, %v2631_v53 }
 0x483   : > { %v1212_v61 = vpop.f32.mrf.mxu0  ;;  %v1271_v54 = vpop.f32.mrf.mxu1 }
 0x484   : > { %1353 = vrot.lane.b32.xlu0 %v1271_v54, %s2138_s22 }
 0x485   : > { %v1214_v56 = vpop.f32.mrf.mxu0  ;;  %v1915_v62 = vpop.f32.mrf.mxu1 }
 0x487   : > { %v1216_v63 = vpop.f32.mrf.mxu0  ;;  %v1274_v60 = vpop.f32.mrf.mxu1 }
 0x488   : > { %1355 = vrot.lane.b32.xlu1 %v1274_v60, %s2138_s22  ;;  %1349 = vrot.lane.b32.xlu0 %v1214_v56, %s2138_s22  ;;  %v1291_v60 = vadd.f32 %v1286_v12, %v2627_v57 }
 0x489   : > { %v1916_v2 = vpop.f32.mrf.mxu1  ;;  %v1218_v3 = vpop.f32.mrf.mxu0 }
 0x48c   : > { %1345 = vrot.lane.b32.xlu0 %v1212_v61, %s2138_s22  ;;  %1351 = vrot.lane.b32.xlu1 %v1218_v3, %s2138_s22 }
 0x490   : > { %1537 = vperm.xlu0 %2018, %v1817_v4   ;;  %1347 = vrot.lane.b32.xlu1 %v1216_v63, %s2138_s22  ;;  %v1290_v63 = vadd.f32 %v1281_v10, %v2623_v45  ;;  %v1293_v4 = vadd.f32 %v1286_v12, %v2629_v46  ;;  %s1931_s22 = smul.u32 12, %s367_s23 }
 0x492   : > { %s2754_s9 = scalar_lea.vmem [#allocation3], %s1931_s22 }
 0x494   : > { %1542 = vperm.xlu1 %2019, %v1818_v9  }
 0x4e6   : > { %v1303_v14 = vpop.permute.xlu0 %1302 }
 0x4ea   : > { %v1305_v47 = vpop.permute.xlu1 %1304  ;;  %v1295_v5 = vpop.permute.xlu0 %1294 }
 0x4eb   : > { %v1311_v28 = vsel %vm1306_vm10, %v1303_v14, %v1295_v5 }
 0x4ec   : > { %v1333_v40 = vsel %vm2659_vm13, %v1311_v28, 0.0 }
 0x4ed   : > { %v1339_v9 = vadd.f32 %v1333_v40, %v1288_v35 }
 0x4ee   : > { %v1297_v17 = vpop.permute.xlu1 %1296  ;;  %v1299_v50 = vpop.permute.xlu0 %1298 }
 0x4ef   : > { %v1309_v52 = vsel %vm1306_vm10, %v1295_v5, %v1299_v50  ;;  %v1307_v24 = vsel %vm1306_vm10, %v1299_v50, %v1303_v14  ;;  %v1312_v33 = vsel %vm1306_vm10, %v1305_v47, %v1297_v17 }
 0x4f0   : > { %v1334_v32 = vsel %vm2648_vm11, %v1309_v52, 0.0  ;;  %v1335_v43 = vsel %vm2665_vm14, %v1307_v24, 0.0  ;;  %v1336_v48 = vsel %vm2659_vm13, %v1312_v33, 0.0  ;;  %v2035_v52 = vld [vmem:[%s2853_s4 + $0x58] sm:$0xff]  }
 0x4f1   : > { %v1340_v44 = vadd.f32 %v1334_v32, %v1289_v36  ;;  %v1341_v16 = vadd.f32 %v1335_v43, %v1290_v63 }
 0x4f2   : > { %v1301_v58 = vpop.permute.xlu1 %1300 }
 0x4f3   : > { %v1310_v27 = vsel %vm1306_vm10, %v1297_v17, %v1301_v58  ;;  %v1308_v41 = vsel %vm1306_vm10, %v1301_v58, %v1305_v47  ;;  %v1342_v47 = vadd.f32 %v1336_v48, %v1291_v60  ;;  %vm1580_vm10 = vcmp.lt.s32.totalorder %v2360_v25, 126 }
 0x4f4   : > { %v1337_v37 = vsel %vm2648_vm11, %v1310_v27, 0.0  ;;  %v1338_v2 = vsel %vm2665_vm14, %v1308_v41, 0.0 }
 0x4f5   : > { %v1343_v61 = vadd.f32 %v1337_v37, %v1292_v39  ;;  %v1344_v10 = vadd.f32 %v1338_v2, %v1293_v4  ;;  %v1609_v37 = vld [vmem:[%s2277_s29] sm:$0xf]  ;;  %s1932_s29 = smul.u32 6, %s2116_s28  ;;  %s1626_s28 = sshll.u32 %s2754_s9, 4  ;;  %s2788_s28 = int_to_ptr.vmem [resolvable:$true] %s1626_s28 }
 0x4f6   : > { %v1354_v8 = vpop.permute.xlu0 %1353  ;;  %1610 = vst [vmem:[%s2754_s9 + $0x8] sm:$0xf] %v1609_v37  ;;  %s2036_s12 = scalar_lea.vmem %s2788_s28, 192  ;;  %p2043_p7 = scmp.lt.s32.totalorder %s2788_s28, %s2041_s21 }
 0x4f7   : > { %s1623_s13 = sadd.s32 %s2112_s27, %s1932_s29  ;;  %p2037_p4 = scmp.ne.s32.totalorder %s2788_s28, %s2036_s12 }
 0x4f8   : > { %s1839_s16 = sshll.u32 %s1623_s13, 6 }
 0x4f9   : > { %s2793_s27 = scalar_lea.hbm %s2856_s7, %s1839_s16  ;;  %p2038_p5 = pnand %p2037_p4, %p2236_p3 }
 0x4fa   : > { %v1350_v23 = vpop.permute.xlu0 %1349  ;;  %v1356_v31 = vpop.permute.xlu1 %1355 }
 0x4fb   : > { %v1358_v34 = vsel %vm1357_vm12, %v1350_v23, %v1354_v8  ;;  %p2039_p6 = pneg %p2038_p5 }
 0x4fc   : > { %v1385_v49 = vsel %vm2669_vm15, %v1358_v34, 0.0 }
 0x4fd   : > { %v1391_v14 = vadd.f32 %v1385_v49, %v1340_v44  ;;  %v1558_v49 = vadd.s32 4294967294, %v2500_v6 }
 0x4fe   : > { %v1346_v53 = vpop.permute.xlu0 %1345  ;;  %v1352_v59 = vpop.permute.xlu1 %1351 }
 0x4ff   : > { %v1360_v54 = vsel %vm1357_vm12, %v1346_v53, %v1350_v23  ;;  %v1362_v56 = vsel %vm1357_vm12, %v1354_v8, %v1346_v53  ;;  %v1359_v62 = vsel %vm1357_vm12, %v1352_v59, %v1356_v31 }
 0x500   : > { %v1388_v3 = vsel %vm2669_vm15, %v1359_v62, 0.0  ;;  %v1384_v5 = vsel %vm2685_vm1, %v1360_v54, 0.0  ;;  %v1386_v45 = vsel %vm2694_vm2, %v1362_v56, 0.0 }
 0x501   : > { %v1394_v15 = vadd.f32 %v1388_v3, %v1343_v61  ;;  %v1390_v19 = vadd.f32 %v1384_v5, %v1339_v9  ;;  %v1392_v21 = vadd.f32 %v1386_v45, %v1341_v16 }
 0x502   : > { %v1348_v57 = vpop.permute.xlu1 %1347 }
 0x503   : > { %v1361_v17 = vsel %vm1357_vm12, %v1348_v57, %v1352_v59  ;;  %v1363_v50 = vsel %vm1357_vm12, %v1356_v31, %v1348_v57  ;;  %v1397_v46 = vpack.c.bf16 %v1394_v15, %v1391_v14  ;;  %v1583_v59 = vadd.s32 2, %v2500_v6 }
 0x504   : > { %v1387_v12 = vsel %vm2685_vm1, %v1361_v17, 0.0  ;;  %v1389_v18 = vsel %vm2694_vm2, %v1363_v50, 0.0 }
 0x505   : > { %v1393_v51 = vadd.f32 %v1387_v12, %v1342_v47  ;;  %v1395_v11 = vadd.f32 %v1389_v18, %v1344_v10  ;;  %1437 = vmatprep.subr.bf16.mxu0 %v1397_v46  ;;  %vm1584_vm4 = vcmp.ge.s32.totalorder %v1583_v59, 0  ;;  %vm1585_vm5 = vcmp.lt.s32.totalorder %v1583_v59, 16 }
 0x506   : > { %vm1586_vm7 = vmand %vm1584_vm4, %vm1585_vm5 }
 0x507   : > { %v1396_v58 = vpack.c.bf16 %v1393_v51, %v1390_v19  ;;  %v1398_v8 = vpack.c.bf16 %v1395_v11, %v1392_v21  ;;  %v1587_v60 = vsel %vm1586_vm7, 1, %v2131_v1 }
 0x508   : > { %v1591_v6 = vrot.slane %v1587_v60, %v2354_v20 }
 0x509   : > { %1438 = vmatpush1.bf16.msra.mxu0 %v1396_v58  ;;  %1918 = vmatpush3.bf16.msra.mxu1 %v1398_v8 }
 0x50a   : > { %vm2769_vm11 = vcmp.eq.s32.totalorder %v1591_v6, 1 }
 0x50b   : > { %v1538_v53 = vpop.permute.xlu0 %1537 }
 0x50c   : > { %1831 = vmatmul.mubr.msk.bf16.vlgmr.msra.gmra.mxu0 %vm590_vm3, %v2033_v22  ;;  %1920 = vmatmul.mubr.msk.bf16.vlgmr.msra.gmra.mxu1 %vm590_vm3, %v2033_v22 }
 0x50d   : > { %1465 = vmatprep.mubr.bf16.mxu0 %v2131_v1  ;;  %1923 = vmatprep.mubr.msk.bf16.mxu1 %vm2132_vm0, %v2130_v0 }
 0x50f   : > { %v1543_v61 = vpop.permute.xlu1 %1542 }
 0x514   : > { %1832 = vmatmul.mubr.msk.bf16.gmra.mxu0 %vm590_vm3, %v2034_v26  ;;  %1924 = vmatmul.mubr.msk.bf16.gmra.mxu1 %vm590_vm3, %v2034_v26 }
 0x515   : > { %1473 = vmatprep.mubr.bf16.mxu0 %v2131_v1  ;;  %1927 = vmatprep.mubr.msk.bf16.mxu1 %vm2132_vm0, %v2130_v0  ;;  %vm1559_vm0 = vcmp.ge.s32.totalorder %v1558_v49, 0 }
 0x51c   : > { %1833 = vmatmul.mubr.msk.bf16.gmra.mxu0 %vm590_vm3, %v2035_v52  ;;  %1928 = vmatmul.mubr.msk.bf16.gmra.mxu1 %vm590_vm3, %v2035_v52  ;;  %vm1560_vm3 = vcmp.lt.s32.totalorder %v1558_v49, 16 }
 0x51d   : > { %vm1561_vm6 = vmand %vm1559_vm0, %vm1560_vm3 }
 0x51e   : > { %v1562_v56 = vsel %vm1561_vm6, 1, %v2131_v1 }
 0x51f   : > { %v1566_v2 = vrot.slane %v1562_v56, %v2354_v20 }
 0x521   : > { %vm2764_vm9 = vcmp.eq.s32.totalorder %v1566_v2, 1 }
 0x5cc   : > { %v1457_v7 = vpop.f32.mrf.mxu0  ;;  %v1516_v27 = vpop.f32.mrf.mxu1 }
 0x5cd   : > { %1547 = vrot.lane.b32.xlu0 %v1457_v7, %s2139_s17 }
 0x5ce   : > { %v1459_v55 = vpop.f32.mrf.mxu0  ;;  %v1921_v13 = vpop.f32.mrf.mxu1 }
 0x5d0   : > { %v1461_v28 = vpop.f32.mrf.mxu0  ;;  %v1518_v29 = vpop.f32.mrf.mxu1 }
 0x5d1   : > { %1551 = vrot.lane.b32.xlu0 %v1459_v55, %s2139_s17  ;;  %1549 = vrot.lane.b32.xlu1 %v1461_v28, %s2139_s17 }
 0x5d2   : > { %v1463_v0 = vpop.f32.mrf.mxu0  ;;  %v1922_v30 = vpop.f32.mrf.mxu1 }
 0x5d4   : > { %v1467_v23 = vpop.f32.mrf.mxu0  ;;  %v1522_v31 = vpop.f32.mrf.mxu1 }
 0x5d5   : > { %1553 = vrot.lane.b32.xlu1 %v1463_v0, %s2139_s17  ;;  %s2042_s17 = scalar_lea.vmem %s2041_s21, 384 }
 0x5d6   : > { %v1468_v24 = vpop.f32.mrf.mxu0  ;;  %v1925_v32 = vpop.f32.mrf.mxu1  ;;  %p2044_p9 = scmp.lt.s32.totalorder %s2042_s17, %s2036_s12 }
 0x5d7   : > { %v1545_v5 = vadd.f32 %v1538_v53, %v1468_v24 }
 0x5d8   : > { %v1470_v33 = vpop.f32.mrf.mxu0  ;;  %v1524_v34 = vpop.f32.mrf.mxu1  ;;  %p2045_p10 = por %p2044_p9, %p2043_p7 }
 0x5da   : > { %v1471_v35 = vpop.f32.mrf.mxu0  ;;  %v1926_v36 = vpop.f32.mrf.mxu1  ;;  %p2046_p11 = pnand %p2045_p10, %p2039_p6 }
 0x5db   : > { %v1546_v17 = vadd.f32 %v1543_v61, %v1471_v35 }
 0x5dc   : > { %v1475_v38 = vpop.f32.mrf.mxu0  ;;  %v1528_v39 = vpop.f32.mrf.mxu1 }
 0x5de   : > { %v1476_v40 = vpop.f32.mrf.mxu0  ;;  %v1929_v41 = vpop.f32.mrf.mxu1 }
 0x5df   : > { %1572 = vrot.lane.b32.xlu0 %v1476_v40, %s2140_s10 }
 0x5e0   : > { %v1478_v42 = vpop.f32.mrf.mxu0  ;;  %v1531_v43 = vpop.f32.mrf.mxu1 }
 0x5e2   : > { %v1479_v44 = vpop.f32.mrf.mxu0  ;;  %v1930_v48 = vpop.f32.mrf.mxu1 }
 0x5e3   : > { %1576 = vrot.lane.b32.xlu0 %v1528_v39, %s2140_s10  ;;  %1574 = vrot.lane.b32.xlu1 %v1479_v44, %s2140_s10 }
 0x5e7   : > { %1578 = vrot.lane.b32.xlu1 %v1531_v43, %s2140_s10 }
 0x63f   : > { %v1548_v54 = vpop.permute.xlu0 %1547 }
 0x643   : > { %v1550_v62 = vpop.permute.xlu1 %1549  ;;  %v1552_v63 = vpop.permute.xlu0 %1551 }
 0x644   : > { %v1556_v14 = vsel %vm1555_vm8, %v1548_v54, %v1552_v63 }
 0x645   : > { %v1568_v1 = vsel %vm2764_vm9, %v1556_v14, 0.0 }
 0x646   : > { %v1570_v50 = vadd.f32 %v1568_v1, %v1545_v5 }
 0x647   : > { %v1554_v3 = vpop.permute.xlu1 %1553 }
 0x648   : > { %v1557_v15 = vsel %vm1555_vm8, %v1550_v62, %v1554_v3 }
 0x649   : > { %v1569_v57 = vsel %vm2764_vm9, %v1557_v15, 0.0 }
 0x64a   : > { %v1571_v12 = vadd.f32 %v1569_v57, %v1546_v17 }
 0x651   : > { %v1573_v4 = vpop.permute.xlu0 %1572 }
 0x655   : > { %v1577_v20 = vpop.permute.xlu0 %1576  ;;  %v1575_v47 = vpop.permute.xlu1 %1574 }
 0x656   : > { %v1581_v45 = vsel %vm1580_vm10, %v1573_v4, %v1577_v20 }
 0x657   : > { %v1593_v10 = vsel %vm2769_vm11, %v1581_v45, 0.0 }
 0x658   : > { %v1595_v18 = vadd.f32 %v1593_v10, %v1570_v50 }
 0x659   : > { %v1579_v46 = vpop.permute.xlu1 %1578 }
 0x65a   : > { %v1582_v19 = vsel %vm1580_vm10, %v1575_v47, %v1579_v46  ;;  %v1597_v11 = vmax.f32 %v1595_v18, 0.0 }
 0x65b   : > { %v1594_v21 = vsel %vm2769_vm11, %v1582_v19, 0.0 }
 0x65c   : > { %v1596_v51 = vadd.f32 %v1594_v21, %v1571_v12 }
 0x65e   : > { %v1598_v58 = vmax.f32 %v1596_v51, 0.0 }
 0x660   : > { %v1849_v25 = vpack.c.bf16 %v1598_v58, %v1597_v11 }
 0x662   : > { %1850 = vst [vmem:[%s2754_s9] sm:$0xff] %v1849_v25  }
 0x663   : > { %2049 = shalt.err (!%p2046_p11)
}
 0x664   : > { %s2050_s23 = scalar_lea.hbm %s2793_s27, 192  ;;  %s2054_s10 = scalar_lea.hbm %s2856_s7, 768 }
 0x665   : > { %p2051_p12 = scmp.ne.s32.totalorder %s2793_s27, %s2050_s23  ;;  %p2055_p1 = scmp.lt.s32.totalorder %s2793_s27, %s2856_s7 }
 0x666   : > { %p2056_p2 = scmp.lt.s32.totalorder %s2054_s10, %s2050_s23 }
 0x667   : > { %p2052_p13 = pnand %p2051_p12, %p2236_p3 }
 0x668   : > { %p2057_p4 = por %p2056_p2, %p2055_p1 }
 0x669   : > { %p2053_p0 = pneg %p2052_p13 }
 0x66b   : > { %p2058_p5 = pnand %p2057_p4, %p2053_p0 }
 0x66d   : > { %2061 = shalt.err (!%p2058_p5)
}
 0x66e   : > { %s2142_s16 = smov 64   ;;  %s2143_s18 = smov 128  }
 0x66f   : > { %s2144_s30 = smov 4  }
 0x670   : > { %1933 = dma.vmem_to_hbm [thread:$0]  (%p2236_p3), %s2788_s28, 192, %s2793_s27, %s2798_s11, %s2142_s16, %s2143_s18, %s2144_s30  }
 0x671 PF: > { %p1939_p6 = scmp.ge.s32.totalorder %s2128_s8, 2  ;;  %s1641_s12 = sand.u32 1, %s2100_s24  }
 0x672   : > { %s1642_s20 = scalar_lea.sflag [#allocation4], %s1641_s12 }
 0x673   : > { %p1936_p7 = pnand %p1939_p6, %p2245_p8 }
 0x675   : > { %p1937_p9 = pneg %p1936_p7 }
 0x677   : > { %2095 = dma.done.wait (%p1937_p9), %s1642_s20, 192  }
 0x678   : > { %2097 = vsyncadd (%p1937_p9), %s1642_s20, 4294967104  ;;  %s20_s8 = sadd.s32 1, %s2128_s8   ;;  %s2907_s27 = sld [smem:[#allocation6_spill]] }
 0x679   : > { %p17_p10 = scmp.ge.s32.totalorder %s20_s8, 6   ;;  %s2908_s28 = sld [smem:[#allocation7_spill]] }
 0x67a   : > { %s2909_s29 = sld [smem:[#allocation8_spill]]  ;;  %s2911_s24 = smov %s2104_s25 }
 0x67b   : > { %s2910_s30 = sld [smem:[#allocation9_spill]]  ;;  %s2912_s25 = smov %s2108_s26 }
 0x67c   : > { %s2913_s26 = smov %s2254_s19  ;;  %19 = sbr.rel (!%p17_p10) target bundleno = 5 (0x5), region = 97 }
 0x681   :  { %1647 = vsyncpa [#allocation4], 1 }
 0x682   :  { %1649 = vsyncpa [#allocation4 + $0x1], 1 }

</bundles_post_ra>
